<compile_context>
chip_gen: v7x
topology: tpu7x:2x2x1
jax: 0.10.0
libtpu: 0.0.40
codegen_flags: <defaults>
</compile_context>

<pallas_src>
import jax
import jax.numpy as jnp
from jax.experimental import pallas as pl
from jax.experimental.pallas import tpu as pltpu

K = 7                   # conv kernel size
PAD = (K - 1) // 2      # SAME padding = 3


def _make_kernel(H, W, lpad, gate_in_f32):
    HW = H * W

    def kernel(w_ref, cmask_ref, x_ref, o_ref, scr_ref):
        # w_ref:     SMEM (2*K*K,) f32   conv weight [in_ch, kh, kw], 1/C folded into ch 0
        # cmask_ref: VMEM (K, HW) f32    0/1 column-validity mask per kw
        # x_ref:     VMEM (bblk, C, HW)  lane-dense input block
        # o_ref:     VMEM (bblk, C, HW)
        # scr_ref:   VMEM (2, bblk, 2*lpad + HW) f32 zero-bordered flat maps
        bblk = x_ref.shape[0]
        xv = x_ref[...]                                   # native dtype, lane-dense

        # Channel sum (mean's 1/C folded into the conv weights) and channel max,
        # accumulated in f32 WITHOUT materializing a full f32 copy of the block.
        csum = jnp.sum(xv, axis=1, dtype=jnp.float32)     # (bblk, HW)
        cmax = jnp.max(xv, axis=1).astype(jnp.float32)    # max is exact in bf16

        # Zero only the border strips each step (cheap; do NOT gate on
        # program_id — unsafe under the 'parallel' axis on v7x megacore).
        zero_border = jnp.zeros((2, bblk, lpad), jnp.float32)
        scr_ref[:, :, :lpad] = zero_border
        scr_ref[:, :, lpad + HW:] = zero_border
        # Lane-aligned (lpad % 128 == 0) unmasked interior stores.
        scr_ref[0, :, lpad:lpad + HW] = csum
        scr_ref[1, :, lpad:lpad + HW] = cmax

        # 7x7 cross-correlation (PyTorch conv2d semantics) on the flattened
        # maps: a (dy, dx) tap is a flat shift of (dy-PAD)*W + (dx-PAD).  The
        # zero border absorbs row under/overflow; the per-dx column mask kills
        # column wrap-around.  One slab per (c, dy) (14 VMEM loads total), 7 dx
        # taps as in-register slices, per-dx partials so the mask is applied
        # once per dx, then a balanced tree reduce.
        cmask = cmask_ref[...]                            # (K, HW)
        parts = [None] * K
        for c in range(2):
            for dy in range(K):
                base = lpad + (dy - PAD) * W - PAD
                slab = scr_ref[c, :, base:base + HW + 2 * PAD]   # (bblk, HW+2*PAD)
                for dx in range(K):
                    wv = w_ref[c * K * K + dy * K + dx]
                    tap = wv * slab[:, dx:dx + HW]
                    parts[dx] = tap if parts[dx] is None else parts[dx] + tap
        for dx in range(K):
            if dx != PAD:                                 # center column never wraps
                parts[dx] = parts[dx] * cmask[dx:dx + 1, :]
        while len(parts) > 1:                             # balanced tree reduce
            nxt = [parts[i] + parts[i + 1] for i in range(0, len(parts) - 1, 2)]
            if len(parts) % 2:
                nxt.append(parts[-1])
            parts = nxt

        gate = jax.nn.sigmoid(parts[0])                   # (bblk, HW) f32

        if gate_in_f32 and xv.dtype != jnp.float32:
            # v5e: no native bf16 VALU — multiply in f32, round only at the store.
            o_ref[...] = (xv.astype(jnp.float32) * gate[:, None, :]).astype(o_ref.dtype)
        else:
            # v6e/v7x (native bf16 VALU) and f32 inputs: multiply in x's dtype.
            o_ref[...] = (xv * gate[:, None, :].astype(xv.dtype)).astype(o_ref.dtype)

    return kernel


def _tpu_vmem_and_kind():
    """Physical per-core VMEM bytes and a lowercase device-kind string."""
    kind = ""
    try:
        kind = jax.devices()[0].device_kind.lower()
    except Exception:
        kind = ""
    phys = None
    try:
        phys = int(pltpu.get_tpu_info().vmem_capacity_bytes)
    except Exception:
        phys = None
    if phys is None or phys <= 0:
        if "v7" in kind:
            phys = 64 << 20
        elif kind:
            phys = 128 << 20          # v5e / v6e
        else:
            phys = 64 << 20           # unknown: be conservative
    return phys, kind


def _pick_batch_block(B, C, HW, itemsize, lpad, budget_bytes, gate_in_f32):
    per_batch = (
        4 * C * HW * itemsize         # double-buffered input + output block
        + 2 * (HW + 2 * lpad) * 4     # zero-bordered flat sum/max scratch (f32)
        + 12 * HW * 4                 # conv slab / partials / gate / reduce temps (f32)
    )
    if gate_in_f32 and itemsize < 4:
        per_batch += C * HW * 4       # f32 product temp before the final store
    fixed = 2 * K * HW * 4            # double-buffered column masks
    avail = max(budget_bytes - fixed, per_batch)
    bblk = max(1, min(B, avail // per_batch))
    # Keep >= 2 grid steps so v7x megacore can shard the 'parallel' batch axis
    # across both TensorCores (harmless on 1-TC v5e/v6e).
    if B >= 2:
        bblk = min(bblk, (B + 1) // 2)
    return int(bblk)


def spatial_attention(x, w):
    """x: (B, C, H, W) NCHW; w: (1, 2, K, K) conv2d(2,1,7,padding=3,bias=False) weight."""
    B, C, H, W = x.shape
    HW = H * W
    lpad = -(-(PAD * W + PAD) // 128) * 128            # lane-aligned zero border

    phys_vmem, kind = _tpu_vmem_and_kind()
    vmem_limit = max(32 << 20, min(int(phys_vmem * 0.75), phys_vmem - (8 << 20)))
    budget = max(16 << 20, int(phys_vmem * 0.5))
    budget = min(budget, vmem_limit - (8 << 20))
    gate_in_f32 = ("v5" in kind) and (x.dtype != jnp.float32)

    bblk = _pick_batch_block(B, C, HW, x.dtype.itemsize, lpad, budget, gate_in_f32)
    grid = (pl.cdiv(B, bblk),)        # ragged last block OK: batch rows independent

    xf = x.reshape(B, C, HW)          # lane-dense last dim
    # Fold the channel-mean's 1/C into the avg-channel (in_ch 0) conv weights.
    w_scaled = (w.astype(jnp.float32)
                * jnp.array([1.0 / C, 1.0], jnp.float32)[None, :, None, None])
    w_flat = w_scaled.reshape(-1)     # (2*K*K,) -> SMEM

    cols = jnp.arange(HW, dtype=jnp.int32) % W
    colmask = jnp.stack(
        [((cols + (dx - PAD) >= 0) & (cols + (dx - PAD) < W)).astype(jnp.float32)
         for dx in range(K)], axis=0)                  # (K, HW)

    out_f = pl.pallas_call(
        _make_kernel(H, W, lpad, gate_in_f32),
        out_shape=jax.ShapeDtypeStruct((B, C, HW), x.dtype),
        grid_spec=pltpu.PrefetchScalarGridSpec(
            num_scalar_prefetch=0,
            grid=grid,
            in_specs=[
                pl.BlockSpec(memory_space=pltpu.MemorySpace.SMEM),    # weights
                pl.BlockSpec((K, HW), lambda b: (0, 0)),              # col masks
                pl.BlockSpec((bblk, C, HW), lambda b: (b, 0, 0)),     # x
            ],
            out_specs=pl.BlockSpec((bblk, C, HW), lambda b: (b, 0, 0)),
            scratch_shapes=[
                pltpu.VMEM((2, bblk, HW + 2 * lpad), jnp.float32),
            ],
        ),
        compiler_params=pltpu.CompilerParams(
            dimension_semantics=("parallel",),          # batch steps independent
            vmem_limit_bytes=int(vmem_limit),
        ),
    )(w_flat, colmask, xf)
    return out_f.reshape(B, C, H, W)


if __name__ == "__main__":
    key = jax.random.PRNGKey(0)
    kx, kw = jax.random.split(key)

    x = jax.random.normal(kx, (2, 4, 16, 16), dtype=jnp.float32)
    # Deterministic synthetic weight for nn.Conv2d(2, 1, 7, padding=3, bias=False).
    w = jax.random.normal(kw, (1, 2, K, K), dtype=jnp.float32) * 0.1

    out = jax.block_until_ready(spatial_attention(x, w))

    # Pure-JAX reference of the PyTorch forward.
    avg_ref = jnp.mean(x, axis=1, keepdims=True)
    max_ref = jnp.max(x, axis=1, keepdims=True)
    y_ref = jnp.concatenate([avg_ref, max_ref], axis=1)
    conv_ref = jax.lax.conv_general_dilated(
        y_ref, w, window_strides=(1, 1), padding="SAME",
        dimension_numbers=("NCHW", "OIHW", "NCHW"))
    ref = x * jax.nn.sigmoid(conv_ref)

    assert out.shape == x.shape and out.dtype == x.dtype
    assert jnp.allclose(out, ref, atol=1e-4, rtol=1e-4), "mismatch vs reference"
    print("KERNEL_OK")
</pallas_src>

<mosaic_0001>
module attributes {stable_mosaic.version = 11 : i64} {
  func.func @kernel(%arg0: i32, %arg1: memref<98xf32, #tpu.memory_space<smem>>, %arg2: memref<7x256xf32, #tpu.memory_space<vmem>>, %arg3: memref<1x4x256xf32, #tpu.memory_space<vmem>>, %arg4: memref<1x4x256xf32, #tpu.memory_space<vmem>>, %arg5: memref<2x1x512xf32, #tpu.memory_space<vmem>>) attributes {dimension_semantics = [#tpu.dimension_semantics<parallel>], iteration_bounds = array<i64: 2>, scalar_prefetch = 0 : i64, scratch_operands = 1 : i64, tpu.core_type = #tpu.core_type<tc>, window_params = [{transform_indices = @transform_0, window_bounds = array<i64: 98>}, {pipeline_mode = #tpu.pipeline_mode<synchronous>, transform_indices = @transform_1, window_bounds = array<i64: 7, 256>}, {transform_indices = @transform_2, window_bounds = array<i64: 1, 4, 256>}, {transform_indices = @transform_3, window_bounds = array<i64: 1, 4, 256>}]} {
    %c0 = arith.constant 0 : index
    %c0_0 = arith.constant 0 : index
    %c0_1 = arith.constant 0 : index
    %0 = vector.load %arg3[%c0, %c0_0, %c0_1] : memref<1x4x256xf32, #tpu.memory_space<vmem>>, vector<1x4x256xf32>
    %cst = arith.constant dense<0.000000e+00> : vector<1x256xf32>
    %1 = vector.multi_reduction <add>, %0, %cst [1] : vector<1x4x256xf32> to vector<1x256xf32>
    %cst_2 = arith.constant dense<0xFF800000> : vector<1x256xf32>
    %2 = vector.multi_reduction <maximumf>, %0, %cst_2 [1] : vector<1x4x256xf32> to vector<1x256xf32>
    %cst_3 = arith.constant 0.000000e+00 : f32
    %3 = vector.broadcast %cst_3 : f32 to vector<2x1x128xf32>
    %c0_4 = arith.constant 0 : index
    %c0_5 = arith.constant 0 : index
    %c0_6 = arith.constant 0 : index
    %4 = vector.load %arg5[%c0_4, %c0_5, %c0_6] : memref<2x1x512xf32, #tpu.memory_space<vmem>>, vector<2x1x128xf32>
    tpu.vector_store %arg5[%c0_4, %c0_5, %c0_6], %3 {strides = array<i32>} : memref<2x1x512xf32, #tpu.memory_space<vmem>>, vector<2x1x128xf32>,
    %c0_7 = arith.constant 0 : index
    %c0_8 = arith.constant 0 : index
    %c384 = arith.constant 384 : index
    %5 = vector.load %arg5[%c0_7, %c0_8, %c384] : memref<2x1x512xf32, #tpu.memory_space<vmem>>, vector<2x1x128xf32>
    tpu.vector_store %arg5[%c0_7, %c0_8, %c384], %3 {strides = array<i32>} : memref<2x1x512xf32, #tpu.memory_space<vmem>>, vector<2x1x128xf32>,
    %c0_9 = arith.constant 0 : index
    %c0_10 = arith.constant 0 : index
    %c128 = arith.constant 128 : index
    %6 = vector.load %arg5[%c0_9, %c0_10, %c128] : memref<2x1x512xf32, #tpu.memory_space<vmem>>, vector<1x1x256xf32>
    %7 = vector.shape_cast %6 : vector<1x1x256xf32> to vector<1x256xf32>
    %8 = vector.shape_cast %1 : vector<1x256xf32> to vector<1x1x256xf32>
    tpu.vector_store %arg5[%c0_9, %c0_10, %c128], %8 {strides = array<i32>} : memref<2x1x512xf32, #tpu.memory_space<vmem>>, vector<1x1x256xf32>,
    %c1 = arith.constant 1 : index
    %c0_11 = arith.constant 0 : index
    %c128_12 = arith.constant 128 : index
    %9 = vector.load %arg5[%c1, %c0_11, %c128_12] : memref<2x1x512xf32, #tpu.memory_space<vmem>>, vector<1x1x256xf32>
    %10 = vector.shape_cast %9 : vector<1x1x256xf32> to vector<1x256xf32>
    %11 = vector.shape_cast %2 : vector<1x256xf32> to vector<1x1x256xf32>
    tpu.vector_store %arg5[%c1, %c0_11, %c128_12], %11 {strides = array<i32>} : memref<2x1x512xf32, #tpu.memory_space<vmem>>, vector<1x1x256xf32>,
    %c0_13 = arith.constant 0 : index
    %c0_14 = arith.constant 0 : index
    %12 = vector.load %arg2[%c0_13, %c0_14] : memref<7x256xf32, #tpu.memory_space<vmem>>, vector<7x256xf32>
    %c0_15 = arith.constant 0 : index
    %c0_16 = arith.constant 0 : index
    %c77 = arith.constant 77 : index
    %13 = vector.load %arg5[%c0_15, %c0_16, %c77] : memref<2x1x512xf32, #tpu.memory_space<vmem>>, vector<1x1x262xf32>
    %14 = vector.shape_cast %13 : vector<1x1x262xf32> to vector<1x262xf32>
    %c0_17 = arith.constant 0 : index
    %15 = memref.load %arg1[%c0_17] : memref<98xf32, #tpu.memory_space<smem>>
    %16 = vector.extract_strided_slice %14 {offsets = [0, 0], sizes = [1, 256], strides = [1, 1]} : vector<1x262xf32> to vector<1x256xf32>
    %17 = vector.broadcast %15 : f32 to vector<1x256xf32>
    %18 = arith.mulf %17, %16 : vector<1x256xf32>
    %c1_18 = arith.constant 1 : index
    %19 = memref.load %arg1[%c1_18] : memref<98xf32, #tpu.memory_space<smem>>
    %20 = vector.extract_strided_slice %14 {offsets = [0, 1], sizes = [1, 256], strides = [1, 1]} : vector<1x262xf32> to vector<1x256xf32>
    %21 = vector.broadcast %19 : f32 to vector<1x256xf32>
    %22 = arith.mulf %21, %20 : vector<1x256xf32>
    %c2 = arith.constant 2 : index
    %23 = memref.load %arg1[%c2] : memref<98xf32, #tpu.memory_space<smem>>
    %24 = vector.extract_strided_slice %14 {offsets = [0, 2], sizes = [1, 256], strides = [1, 1]} : vector<1x262xf32> to vector<1x256xf32>
    %25 = vector.broadcast %23 : f32 to vector<1x256xf32>
    %26 = arith.mulf %25, %24 : vector<1x256xf32>
    %c3 = arith.constant 3 : index
    %27 = memref.load %arg1[%c3] : memref<98xf32, #tpu.memory_space<smem>>
    %28 = vector.extract_strided_slice %14 {offsets = [0, 3], sizes = [1, 256], strides = [1, 1]} : vector<1x262xf32> to vector<1x256xf32>
    %29 = vector.broadcast %27 : f32 to vector<1x256xf32>
    %30 = arith.mulf %29, %28 : vector<1x256xf32>
    %c4 = arith.constant 4 : index
    %31 = memref.load %arg1[%c4] : memref<98xf32, #tpu.memory_space<smem>>
    %32 = vector.extract_strided_slice %14 {offsets = [0, 4], sizes = [1, 256], strides = [1, 1]} : vector<1x262xf32> to vector<1x256xf32>
    %33 = vector.broadcast %31 : f32 to vector<1x256xf32>
    %34 = arith.mulf %33, %32 : vector<1x256xf32>
    %c5 = arith.constant 5 : index
    %35 = memref.load %arg1[%c5] : memref<98xf32, #tpu.memory_space<smem>>
    %36 = vector.extract_strided_slice %14 {offsets = [0, 5], sizes = [1, 256], strides = [1, 1]} : vector<1x262xf32> to vector<1x256xf32>
    %37 = vector.broadcast %35 : f32 to vector<1x256xf32>
    %38 = arith.mulf %37, %36 : vector<1x256xf32>
    %c6 = arith.constant 6 : index
    %39 = memref.load %arg1[%c6] : memref<98xf32, #tpu.memory_space<smem>>
    %40 = vector.extract_strided_slice %14 {offsets = [0, 6], sizes = [1, 256], strides = [1, 1]} : vector<1x262xf32> to vector<1x256xf32>
    %41 = vector.broadcast %39 : f32 to vector<1x256xf32>
    %42 = arith.mulf %41, %40 : vector<1x256xf32>
    %c0_19 = arith.constant 0 : index
    %c0_20 = arith.constant 0 : index
    %c93 = arith.constant 93 : index
    %43 = vector.load %arg5[%c0_19, %c0_20, %c93] : memref<2x1x512xf32, #tpu.memory_space<vmem>>, vector<1x1x262xf32>
    %44 = vector.shape_cast %43 : vector<1x1x262xf32> to vector<1x262xf32>
    %c7 = arith.constant 7 : index
    %45 = memref.load %arg1[%c7] : memref<98xf32, #tpu.memory_space<smem>>
    %46 = vector.extract_strided_slice %44 {offsets = [0, 0], sizes = [1, 256], strides = [1, 1]} : vector<1x262xf32> to vector<1x256xf32>
    %47 = vector.broadcast %45 : f32 to vector<1x256xf32>
    %48 = arith.mulf %47, %46 : vector<1x256xf32>
    %49 = arith.addf %18, %48 : vector<1x256xf32>
    %c8 = arith.constant 8 : index
    %50 = memref.load %arg1[%c8] : memref<98xf32, #tpu.memory_space<smem>>
    %51 = vector.extract_strided_slice %44 {offsets = [0, 1], sizes = [1, 256], strides = [1, 1]} : vector<1x262xf32> to vector<1x256xf32>
    %52 = vector.broadcast %50 : f32 to vector<1x256xf32>
    %53 = arith.mulf %52, %51 : vector<1x256xf32>
    %54 = arith.addf %22, %53 : vector<1x256xf32>
    %c9 = arith.constant 9 : index
    %55 = memref.load %arg1[%c9] : memref<98xf32, #tpu.memory_space<smem>>
    %56 = vector.extract_strided_slice %44 {offsets = [0, 2], sizes = [1, 256], strides = [1, 1]} : vector<1x262xf32> to vector<1x256xf32>
    %57 = vector.broadcast %55 : f32 to vector<1x256xf32>
    %58 = arith.mulf %57, %56 : vector<1x256xf32>
    %59 = arith.addf %26, %58 : vector<1x256xf32>
    %c10 = arith.constant 10 : index
    %60 = memref.load %arg1[%c10] : memref<98xf32, #tpu.memory_space<smem>>
    %61 = vector.extract_strided_slice %44 {offsets = [0, 3], sizes = [1, 256], strides = [1, 1]} : vector<1x262xf32> to vector<1x256xf32>
    %62 = vector.broadcast %60 : f32 to vector<1x256xf32>
    %63 = arith.mulf %62, %61 : vector<1x256xf32>
    %64 = arith.addf %30, %63 : vector<1x256xf32>
    %c11 = arith.constant 11 : index
    %65 = memref.load %arg1[%c11] : memref<98xf32, #tpu.memory_space<smem>>
    %66 = vector.extract_strided_slice %44 {offsets = [0, 4], sizes = [1, 256], strides = [1, 1]} : vector<1x262xf32> to vector<1x256xf32>
    %67 = vector.broadcast %65 : f32 to vector<1x256xf32>
    %68 = arith.mulf %67, %66 : vector<1x256xf32>
    %69 = arith.addf %34, %68 : vector<1x256xf32>
    %c12 = arith.constant 12 : index
    %70 = memref.load %arg1[%c12] : memref<98xf32, #tpu.memory_space<smem>>
    %71 = vector.extract_strided_slice %44 {offsets = [0, 5], sizes = [1, 256], strides = [1, 1]} : vector<1x262xf32> to vector<1x256xf32>
    %72 = vector.broadcast %70 : f32 to vector<1x256xf32>
    %73 = arith.mulf %72, %71 : vector<1x256xf32>
    %74 = arith.addf %38, %73 : vector<1x256xf32>
    %c13 = arith.constant 13 : index
    %75 = memref.load %arg1[%c13] : memref<98xf32, #tpu.memory_space<smem>>
    %76 = vector.extract_strided_slice %44 {offsets = [0, 6], sizes = [1, 256], strides = [1, 1]} : vector<1x262xf32> to vector<1x256xf32>
    %77 = vector.broadcast %75 : f32 to vector<1x256xf32>
    %78 = arith.mulf %77, %76 : vector<1x256xf32>
    %79 = arith.addf %42, %78 : vector<1x256xf32>
    %c0_21 = arith.constant 0 : index
    %c0_22 = arith.constant 0 : index
    %c109 = arith.constant 109 : index
    %80 = vector.load %arg5[%c0_21, %c0_22, %c109] : memref<2x1x512xf32, #tpu.memory_space<vmem>>, vector<1x1x262xf32>
    %81 = vector.shape_cast %80 : vector<1x1x262xf32> to vector<1x262xf32>
    %c14 = arith.constant 14 : index
    %82 = memref.load %arg1[%c14] : memref<98xf32, #tpu.memory_space<smem>>
    %83 = vector.extract_strided_slice %81 {offsets = [0, 0], sizes = [1, 256], strides = [1, 1]} : vector<1x262xf32> to vector<1x256xf32>
    %84 = vector.broadcast %82 : f32 to vector<1x256xf32>
    %85 = arith.mulf %84, %83 : vector<1x256xf32>
    %86 = arith.addf %49, %85 : vector<1x256xf32>
    %c15 = arith.constant 15 : index
    %87 = memref.load %arg1[%c15] : memref<98xf32, #tpu.memory_space<smem>>
    %88 = vector.extract_strided_slice %81 {offsets = [0, 1], sizes = [1, 256], strides = [1, 1]} : vector<1x262xf32> to vector<1x256xf32>
    %89 = vector.broadcast %87 : f32 to vector<1x256xf32>
    %90 = arith.mulf %89, %88 : vector<1x256xf32>
    %91 = arith.addf %54, %90 : vector<1x256xf32>
    %c16 = arith.constant 16 : index
    %92 = memref.load %arg1[%c16] : memref<98xf32, #tpu.memory_space<smem>>
    %93 = vector.extract_strided_slice %81 {offsets = [0, 2], sizes = [1, 256], strides = [1, 1]} : vector<1x262xf32> to vector<1x256xf32>
    %94 = vector.broadcast %92 : f32 to vector<1x256xf32>
    %95 = arith.mulf %94, %93 : vector<1x256xf32>
    %96 = arith.addf %59, %95 : vector<1x256xf32>
    %c17 = arith.constant 17 : index
    %97 = memref.load %arg1[%c17] : memref<98xf32, #tpu.memory_space<smem>>
    %98 = vector.extract_strided_slice %81 {offsets = [0, 3], sizes = [1, 256], strides = [1, 1]} : vector<1x262xf32> to vector<1x256xf32>
    %99 = vector.broadcast %97 : f32 to vector<1x256xf32>
    %100 = arith.mulf %99, %98 : vector<1x256xf32>
    %101 = arith.addf %64, %100 : vector<1x256xf32>
    %c18 = arith.constant 18 : index
    %102 = memref.load %arg1[%c18] : memref<98xf32, #tpu.memory_space<smem>>
    %103 = vector.extract_strided_slice %81 {offsets = [0, 4], sizes = [1, 256], strides = [1, 1]} : vector<1x262xf32> to vector<1x256xf32>
    %104 = vector.broadcast %102 : f32 to vector<1x256xf32>
    %105 = arith.mulf %104, %103 : vector<1x256xf32>
    %106 = arith.addf %69, %105 : vector<1x256xf32>
    %c19 = arith.constant 19 : index
    %107 = memref.load %arg1[%c19] : memref<98xf32, #tpu.memory_space<smem>>
    %108 = vector.extract_strided_slice %81 {offsets = [0, 5], sizes = [1, 256], strides = [1, 1]} : vector<1x262xf32> to vector<1x256xf32>
    %109 = vector.broadcast %107 : f32 to vector<1x256xf32>
    %110 = arith.mulf %109, %108 : vector<1x256xf32>
    %111 = arith.addf %74, %110 : vector<1x256xf32>
    %c20 = arith.constant 20 : index
    %112 = memref.load %arg1[%c20] : memref<98xf32, #tpu.memory_space<smem>>
    %113 = vector.extract_strided_slice %81 {offsets = [0, 6], sizes = [1, 256], strides = [1, 1]} : vector<1x262xf32> to vector<1x256xf32>
    %114 = vector.broadcast %112 : f32 to vector<1x256xf32>
    %115 = arith.mulf %114, %113 : vector<1x256xf32>
    %116 = arith.addf %79, %115 : vector<1x256xf32>
    %c0_23 = arith.constant 0 : index
    %c0_24 = arith.constant 0 : index
    %c125 = arith.constant 125 : index
    %117 = vector.load %arg5[%c0_23, %c0_24, %c125] : memref<2x1x512xf32, #tpu.memory_space<vmem>>, vector<1x1x262xf32>
    %118 = vector.shape_cast %117 : vector<1x1x262xf32> to vector<1x262xf32>
    %c21 = arith.constant 21 : index
    %119 = memref.load %arg1[%c21] : memref<98xf32, #tpu.memory_space<smem>>
    %120 = vector.extract_strided_slice %118 {offsets = [0, 0], sizes = [1, 256], strides = [1, 1]} : vector<1x262xf32> to vector<1x256xf32>
    %121 = vector.broadcast %119 : f32 to vector<1x256xf32>
    %122 = arith.mulf %121, %120 : vector<1x256xf32>
    %123 = arith.addf %86, %122 : vector<1x256xf32>
    %c22 = arith.constant 22 : index
    %124 = memref.load %arg1[%c22] : memref<98xf32, #tpu.memory_space<smem>>
    %125 = vector.extract_strided_slice %118 {offsets = [0, 1], sizes = [1, 256], strides = [1, 1]} : vector<1x262xf32> to vector<1x256xf32>
    %126 = vector.broadcast %124 : f32 to vector<1x256xf32>
    %127 = arith.mulf %126, %125 : vector<1x256xf32>
    %128 = arith.addf %91, %127 : vector<1x256xf32>
    %c23 = arith.constant 23 : index
    %129 = memref.load %arg1[%c23] : memref<98xf32, #tpu.memory_space<smem>>
    %130 = vector.extract_strided_slice %118 {offsets = [0, 2], sizes = [1, 256], strides = [1, 1]} : vector<1x262xf32> to vector<1x256xf32>
    %131 = vector.broadcast %129 : f32 to vector<1x256xf32>
    %132 = arith.mulf %131, %130 : vector<1x256xf32>
    %133 = arith.addf %96, %132 : vector<1x256xf32>
    %c24 = arith.constant 24 : index
    %134 = memref.load %arg1[%c24] : memref<98xf32, #tpu.memory_space<smem>>
    %135 = vector.extract_strided_slice %118 {offsets = [0, 3], sizes = [1, 256], strides = [1, 1]} : vector<1x262xf32> to vector<1x256xf32>
    %136 = vector.broadcast %134 : f32 to vector<1x256xf32>
    %137 = arith.mulf %136, %135 : vector<1x256xf32>
    %138 = arith.addf %101, %137 : vector<1x256xf32>
    %c25 = arith.constant 25 : index
    %139 = memref.load %arg1[%c25] : memref<98xf32, #tpu.memory_space<smem>>
    %140 = vector.extract_strided_slice %118 {offsets = [0, 4], sizes = [1, 256], strides = [1, 1]} : vector<1x262xf32> to vector<1x256xf32>
    %141 = vector.broadcast %139 : f32 to vector<1x256xf32>
    %142 = arith.mulf %141, %140 : vector<1x256xf32>
    %143 = arith.addf %106, %142 : vector<1x256xf32>
    %c26 = arith.constant 26 : index
    %144 = memref.load %arg1[%c26] : memref<98xf32, #tpu.memory_space<smem>>
    %145 = vector.extract_strided_slice %118 {offsets = [0, 5], sizes = [1, 256], strides = [1, 1]} : vector<1x262xf32> to vector<1x256xf32>
    %146 = vector.broadcast %144 : f32 to vector<1x256xf32>
    %147 = arith.mulf %146, %145 : vector<1x256xf32>
    %148 = arith.addf %111, %147 : vector<1x256xf32>
    %c27 = arith.constant 27 : index
    %149 = memref.load %arg1[%c27] : memref<98xf32, #tpu.memory_space<smem>>
    %150 = vector.extract_strided_slice %118 {offsets = [0, 6], sizes = [1, 256], strides = [1, 1]} : vector<1x262xf32> to vector<1x256xf32>
    %151 = vector.broadcast %149 : f32 to vector<1x256xf32>
    %152 = arith.mulf %151, %150 : vector<1x256xf32>
    %153 = arith.addf %116, %152 : vector<1x256xf32>
    %c0_25 = arith.constant 0 : index
    %c0_26 = arith.constant 0 : index
    %c141 = arith.constant 141 : index
    %154 = vector.load %arg5[%c0_25, %c0_26, %c141] : memref<2x1x512xf32, #tpu.memory_space<vmem>>, vector<1x1x262xf32>
    %155 = vector.shape_cast %154 : vector<1x1x262xf32> to vector<1x262xf32>
    %c28 = arith.constant 28 : index
    %156 = memref.load %arg1[%c28] : memref<98xf32, #tpu.memory_space<smem>>
    %157 = vector.extract_strided_slice %155 {offsets = [0, 0], sizes = [1, 256], strides = [1, 1]} : vector<1x262xf32> to vector<1x256xf32>
    %158 = vector.broadcast %156 : f32 to vector<1x256xf32>
    %159 = arith.mulf %158, %157 : vector<1x256xf32>
    %160 = arith.addf %123, %159 : vector<1x256xf32>
    %c29 = arith.constant 29 : index
    %161 = memref.load %arg1[%c29] : memref<98xf32, #tpu.memory_space<smem>>
    %162 = vector.extract_strided_slice %155 {offsets = [0, 1], sizes = [1, 256], strides = [1, 1]} : vector<1x262xf32> to vector<1x256xf32>
    %163 = vector.broadcast %161 : f32 to vector<1x256xf32>
    %164 = arith.mulf %163, %162 : vector<1x256xf32>
    %165 = arith.addf %128, %164 : vector<1x256xf32>
    %c30 = arith.constant 30 : index
    %166 = memref.load %arg1[%c30] : memref<98xf32, #tpu.memory_space<smem>>
    %167 = vector.extract_strided_slice %155 {offsets = [0, 2], sizes = [1, 256], strides = [1, 1]} : vector<1x262xf32> to vector<1x256xf32>
    %168 = vector.broadcast %166 : f32 to vector<1x256xf32>
    %169 = arith.mulf %168, %167 : vector<1x256xf32>
    %170 = arith.addf %133, %169 : vector<1x256xf32>
    %c31 = arith.constant 31 : index
    %171 = memref.load %arg1[%c31] : memref<98xf32, #tpu.memory_space<smem>>
    %172 = vector.extract_strided_slice %155 {offsets = [0, 3], sizes = [1, 256], strides = [1, 1]} : vector<1x262xf32> to vector<1x256xf32>
    %173 = vector.broadcast %171 : f32 to vector<1x256xf32>
    %174 = arith.mulf %173, %172 : vector<1x256xf32>
    %175 = arith.addf %138, %174 : vector<1x256xf32>
    %c32 = arith.constant 32 : index
    %176 = memref.load %arg1[%c32] : memref<98xf32, #tpu.memory_space<smem>>
    %177 = vector.extract_strided_slice %155 {offsets = [0, 4], sizes = [1, 256], strides = [1, 1]} : vector<1x262xf32> to vector<1x256xf32>
    %178 = vector.broadcast %176 : f32 to vector<1x256xf32>
    %179 = arith.mulf %178, %177 : vector<1x256xf32>
    %180 = arith.addf %143, %179 : vector<1x256xf32>
    %c33 = arith.constant 33 : index
    %181 = memref.load %arg1[%c33] : memref<98xf32, #tpu.memory_space<smem>>
    %182 = vector.extract_strided_slice %155 {offsets = [0, 5], sizes = [1, 256], strides = [1, 1]} : vector<1x262xf32> to vector<1x256xf32>
    %183 = vector.broadcast %181 : f32 to vector<1x256xf32>
    %184 = arith.mulf %183, %182 : vector<1x256xf32>
    %185 = arith.addf %148, %184 : vector<1x256xf32>
    %c34 = arith.constant 34 : index
    %186 = memref.load %arg1[%c34] : memref<98xf32, #tpu.memory_space<smem>>
    %187 = vector.extract_strided_slice %155 {offsets = [0, 6], sizes = [1, 256], strides = [1, 1]} : vector<1x262xf32> to vector<1x256xf32>
    %188 = vector.broadcast %186 : f32 to vector<1x256xf32>
    %189 = arith.mulf %188, %187 : vector<1x256xf32>
    %190 = arith.addf %153, %189 : vector<1x256xf32>
    %c0_27 = arith.constant 0 : index
    %c0_28 = arith.constant 0 : index
    %c157 = arith.constant 157 : index
    %191 = vector.load %arg5[%c0_27, %c0_28, %c157] : memref<2x1x512xf32, #tpu.memory_space<vmem>>, vector<1x1x262xf32>
    %192 = vector.shape_cast %191 : vector<1x1x262xf32> to vector<1x262xf32>
    %c35 = arith.constant 35 : index
    %193 = memref.load %arg1[%c35] : memref<98xf32, #tpu.memory_space<smem>>
    %194 = vector.extract_strided_slice %192 {offsets = [0, 0], sizes = [1, 256], strides = [1, 1]} : vector<1x262xf32> to vector<1x256xf32>
    %195 = vector.broadcast %193 : f32 to vector<1x256xf32>
    %196 = arith.mulf %195, %194 : vector<1x256xf32>
    %197 = arith.addf %160, %196 : vector<1x256xf32>
    %c36 = arith.constant 36 : index
    %198 = memref.load %arg1[%c36] : memref<98xf32, #tpu.memory_space<smem>>
    %199 = vector.extract_strided_slice %192 {offsets = [0, 1], sizes = [1, 256], strides = [1, 1]} : vector<1x262xf32> to vector<1x256xf32>
    %200 = vector.broadcast %198 : f32 to vector<1x256xf32>
    %201 = arith.mulf %200, %199 : vector<1x256xf32>
    %202 = arith.addf %165, %201 : vector<1x256xf32>
    %c37 = arith.constant 37 : index
    %203 = memref.load %arg1[%c37] : memref<98xf32, #tpu.memory_space<smem>>
    %204 = vector.extract_strided_slice %192 {offsets = [0, 2], sizes = [1, 256], strides = [1, 1]} : vector<1x262xf32> to vector<1x256xf32>
    %205 = vector.broadcast %203 : f32 to vector<1x256xf32>
    %206 = arith.mulf %205, %204 : vector<1x256xf32>
    %207 = arith.addf %170, %206 : vector<1x256xf32>
    %c38 = arith.constant 38 : index
    %208 = memref.load %arg1[%c38] : memref<98xf32, #tpu.memory_space<smem>>
    %209 = vector.extract_strided_slice %192 {offsets = [0, 3], sizes = [1, 256], strides = [1, 1]} : vector<1x262xf32> to vector<1x256xf32>
    %210 = vector.broadcast %208 : f32 to vector<1x256xf32>
    %211 = arith.mulf %210, %209 : vector<1x256xf32>
    %212 = arith.addf %175, %211 : vector<1x256xf32>
    %c39 = arith.constant 39 : index
    %213 = memref.load %arg1[%c39] : memref<98xf32, #tpu.memory_space<smem>>
    %214 = vector.extract_strided_slice %192 {offsets = [0, 4], sizes = [1, 256], strides = [1, 1]} : vector<1x262xf32> to vector<1x256xf32>
    %215 = vector.broadcast %213 : f32 to vector<1x256xf32>
    %216 = arith.mulf %215, %214 : vector<1x256xf32>
    %217 = arith.addf %180, %216 : vector<1x256xf32>
    %c40 = arith.constant 40 : index
    %218 = memref.load %arg1[%c40] : memref<98xf32, #tpu.memory_space<smem>>
    %219 = vector.extract_strided_slice %192 {offsets = [0, 5], sizes = [1, 256], strides = [1, 1]} : vector<1x262xf32> to vector<1x256xf32>
    %220 = vector.broadcast %218 : f32 to vector<1x256xf32>
    %221 = arith.mulf %220, %219 : vector<1x256xf32>
    %222 = arith.addf %185, %221 : vector<1x256xf32>
    %c41 = arith.constant 41 : index
    %223 = memref.load %arg1[%c41] : memref<98xf32, #tpu.memory_space<smem>>
    %224 = vector.extract_strided_slice %192 {offsets = [0, 6], sizes = [1, 256], strides = [1, 1]} : vector<1x262xf32> to vector<1x256xf32>
    %225 = vector.broadcast %223 : f32 to vector<1x256xf32>
    %226 = arith.mulf %225, %224 : vector<1x256xf32>
    %227 = arith.addf %190, %226 : vector<1x256xf32>
    %c0_29 = arith.constant 0 : index
    %c0_30 = arith.constant 0 : index
    %c173 = arith.constant 173 : index
    %228 = vector.load %arg5[%c0_29, %c0_30, %c173] : memref<2x1x512xf32, #tpu.memory_space<vmem>>, vector<1x1x262xf32>
    %229 = vector.shape_cast %228 : vector<1x1x262xf32> to vector<1x262xf32>
    %c42 = arith.constant 42 : index
    %230 = memref.load %arg1[%c42] : memref<98xf32, #tpu.memory_space<smem>>
    %231 = vector.extract_strided_slice %229 {offsets = [0, 0], sizes = [1, 256], strides = [1, 1]} : vector<1x262xf32> to vector<1x256xf32>
    %232 = vector.broadcast %230 : f32 to vector<1x256xf32>
    %233 = arith.mulf %232, %231 : vector<1x256xf32>
    %234 = arith.addf %197, %233 : vector<1x256xf32>
    %c43 = arith.constant 43 : index
    %235 = memref.load %arg1[%c43] : memref<98xf32, #tpu.memory_space<smem>>
    %236 = vector.extract_strided_slice %229 {offsets = [0, 1], sizes = [1, 256], strides = [1, 1]} : vector<1x262xf32> to vector<1x256xf32>
    %237 = vector.broadcast %235 : f32 to vector<1x256xf32>
    %238 = arith.mulf %237, %236 : vector<1x256xf32>
    %239 = arith.addf %202, %238 : vector<1x256xf32>
    %c44 = arith.constant 44 : index
    %240 = memref.load %arg1[%c44] : memref<98xf32, #tpu.memory_space<smem>>
    %241 = vector.extract_strided_slice %229 {offsets = [0, 2], sizes = [1, 256], strides = [1, 1]} : vector<1x262xf32> to vector<1x256xf32>
    %242 = vector.broadcast %240 : f32 to vector<1x256xf32>
    %243 = arith.mulf %242, %241 : vector<1x256xf32>
    %244 = arith.addf %207, %243 : vector<1x256xf32>
    %c45 = arith.constant 45 : index
    %245 = memref.load %arg1[%c45] : memref<98xf32, #tpu.memory_space<smem>>
    %246 = vector.extract_strided_slice %229 {offsets = [0, 3], sizes = [1, 256], strides = [1, 1]} : vector<1x262xf32> to vector<1x256xf32>
    %247 = vector.broadcast %245 : f32 to vector<1x256xf32>
    %248 = arith.mulf %247, %246 : vector<1x256xf32>
    %249 = arith.addf %212, %248 : vector<1x256xf32>
    %c46 = arith.constant 46 : index
    %250 = memref.load %arg1[%c46] : memref<98xf32, #tpu.memory_space<smem>>
    %251 = vector.extract_strided_slice %229 {offsets = [0, 4], sizes = [1, 256], strides = [1, 1]} : vector<1x262xf32> to vector<1x256xf32>
    %252 = vector.broadcast %250 : f32 to vector<1x256xf32>
    %253 = arith.mulf %252, %251 : vector<1x256xf32>
    %254 = arith.addf %217, %253 : vector<1x256xf32>
    %c47 = arith.constant 47 : index
    %255 = memref.load %arg1[%c47] : memref<98xf32, #tpu.memory_space<smem>>
    %256 = vector.extract_strided_slice %229 {offsets = [0, 5], sizes = [1, 256], strides = [1, 1]} : vector<1x262xf32> to vector<1x256xf32>
    %257 = vector.broadcast %255 : f32 to vector<1x256xf32>
    %258 = arith.mulf %257, %256 : vector<1x256xf32>
    %259 = arith.addf %222, %258 : vector<1x256xf32>
    %c48 = arith.constant 48 : index
    %260 = memref.load %arg1[%c48] : memref<98xf32, #tpu.memory_space<smem>>
    %261 = vector.extract_strided_slice %229 {offsets = [0, 6], sizes = [1, 256], strides = [1, 1]} : vector<1x262xf32> to vector<1x256xf32>
    %262 = vector.broadcast %260 : f32 to vector<1x256xf32>
    %263 = arith.mulf %262, %261 : vector<1x256xf32>
    %264 = arith.addf %227, %263 : vector<1x256xf32>
    %c1_31 = arith.constant 1 : index
    %c0_32 = arith.constant 0 : index
    %c77_33 = arith.constant 77 : index
    %265 = vector.load %arg5[%c1_31, %c0_32, %c77_33] : memref<2x1x512xf32, #tpu.memory_space<vmem>>, vector<1x1x262xf32>
    %266 = vector.shape_cast %265 : vector<1x1x262xf32> to vector<1x262xf32>
    %c49 = arith.constant 49 : index
    %267 = memref.load %arg1[%c49] : memref<98xf32, #tpu.memory_space<smem>>
    %268 = vector.extract_strided_slice %266 {offsets = [0, 0], sizes = [1, 256], strides = [1, 1]} : vector<1x262xf32> to vector<1x256xf32>
    %269 = vector.broadcast %267 : f32 to vector<1x256xf32>
    %270 = arith.mulf %269, %268 : vector<1x256xf32>
    %271 = arith.addf %234, %270 : vector<1x256xf32>
    %c50 = arith.constant 50 : index
    %272 = memref.load %arg1[%c50] : memref<98xf32, #tpu.memory_space<smem>>
    %273 = vector.extract_strided_slice %266 {offsets = [0, 1], sizes = [1, 256], strides = [1, 1]} : vector<1x262xf32> to vector<1x256xf32>
    %274 = vector.broadcast %272 : f32 to vector<1x256xf32>
    %275 = arith.mulf %274, %273 : vector<1x256xf32>
    %276 = arith.addf %239, %275 : vector<1x256xf32>
    %c51 = arith.constant 51 : index
    %277 = memref.load %arg1[%c51] : memref<98xf32, #tpu.memory_space<smem>>
    %278 = vector.extract_strided_slice %266 {offsets = [0, 2], sizes = [1, 256], strides = [1, 1]} : vector<1x262xf32> to vector<1x256xf32>
    %279 = vector.broadcast %277 : f32 to vector<1x256xf32>
    %280 = arith.mulf %279, %278 : vector<1x256xf32>
    %281 = arith.addf %244, %280 : vector<1x256xf32>
    %c52 = arith.constant 52 : index
    %282 = memref.load %arg1[%c52] : memref<98xf32, #tpu.memory_space<smem>>
    %283 = vector.extract_strided_slice %266 {offsets = [0, 3], sizes = [1, 256], strides = [1, 1]} : vector<1x262xf32> to vector<1x256xf32>
    %284 = vector.broadcast %282 : f32 to vector<1x256xf32>
    %285 = arith.mulf %284, %283 : vector<1x256xf32>
    %286 = arith.addf %249, %285 : vector<1x256xf32>
    %c53 = arith.constant 53 : index
    %287 = memref.load %arg1[%c53] : memref<98xf32, #tpu.memory_space<smem>>
    %288 = vector.extract_strided_slice %266 {offsets = [0, 4], sizes = [1, 256], strides = [1, 1]} : vector<1x262xf32> to vector<1x256xf32>
    %289 = vector.broadcast %287 : f32 to vector<1x256xf32>
    %290 = arith.mulf %289, %288 : vector<1x256xf32>
    %291 = arith.addf %254, %290 : vector<1x256xf32>
    %c54 = arith.constant 54 : index
    %292 = memref.load %arg1[%c54] : memref<98xf32, #tpu.memory_space<smem>>
    %293 = vector.extract_strided_slice %266 {offsets = [0, 5], sizes = [1, 256], strides = [1, 1]} : vector<1x262xf32> to vector<1x256xf32>
    %294 = vector.broadcast %292 : f32 to vector<1x256xf32>
    %295 = arith.mulf %294, %293 : vector<1x256xf32>
    %296 = arith.addf %259, %295 : vector<1x256xf32>
    %c55 = arith.constant 55 : index
    %297 = memref.load %arg1[%c55] : memref<98xf32, #tpu.memory_space<smem>>
    %298 = vector.extract_strided_slice %266 {offsets = [0, 6], sizes = [1, 256], strides = [1, 1]} : vector<1x262xf32> to vector<1x256xf32>
    %299 = vector.broadcast %297 : f32 to vector<1x256xf32>
    %300 = arith.mulf %299, %298 : vector<1x256xf32>
    %301 = arith.addf %264, %300 : vector<1x256xf32>
    %c1_34 = arith.constant 1 : index
    %c0_35 = arith.constant 0 : index
    %c93_36 = arith.constant 93 : index
    %302 = vector.load %arg5[%c1_34, %c0_35, %c93_36] : memref<2x1x512xf32, #tpu.memory_space<vmem>>, vector<1x1x262xf32>
    %303 = vector.shape_cast %302 : vector<1x1x262xf32> to vector<1x262xf32>
    %c56 = arith.constant 56 : index
    %304 = memref.load %arg1[%c56] : memref<98xf32, #tpu.memory_space<smem>>
    %305 = vector.extract_strided_slice %303 {offsets = [0, 0], sizes = [1, 256], strides = [1, 1]} : vector<1x262xf32> to vector<1x256xf32>
    %306 = vector.broadcast %304 : f32 to vector<1x256xf32>
    %307 = arith.mulf %306, %305 : vector<1x256xf32>
    %308 = arith.addf %271, %307 : vector<1x256xf32>
    %c57 = arith.constant 57 : index
    %309 = memref.load %arg1[%c57] : memref<98xf32, #tpu.memory_space<smem>>
    %310 = vector.extract_strided_slice %303 {offsets = [0, 1], sizes = [1, 256], strides = [1, 1]} : vector<1x262xf32> to vector<1x256xf32>
    %311 = vector.broadcast %309 : f32 to vector<1x256xf32>
    %312 = arith.mulf %311, %310 : vector<1x256xf32>
    %313 = arith.addf %276, %312 : vector<1x256xf32>
    %c58 = arith.constant 58 : index
    %314 = memref.load %arg1[%c58] : memref<98xf32, #tpu.memory_space<smem>>
    %315 = vector.extract_strided_slice %303 {offsets = [0, 2], sizes = [1, 256], strides = [1, 1]} : vector<1x262xf32> to vector<1x256xf32>
    %316 = vector.broadcast %314 : f32 to vector<1x256xf32>
    %317 = arith.mulf %316, %315 : vector<1x256xf32>
    %318 = arith.addf %281, %317 : vector<1x256xf32>
    %c59 = arith.constant 59 : index
    %319 = memref.load %arg1[%c59] : memref<98xf32, #tpu.memory_space<smem>>
    %320 = vector.extract_strided_slice %303 {offsets = [0, 3], sizes = [1, 256], strides = [1, 1]} : vector<1x262xf32> to vector<1x256xf32>
    %321 = vector.broadcast %319 : f32 to vector<1x256xf32>
    %322 = arith.mulf %321, %320 : vector<1x256xf32>
    %323 = arith.addf %286, %322 : vector<1x256xf32>
    %c60 = arith.constant 60 : index
    %324 = memref.load %arg1[%c60] : memref<98xf32, #tpu.memory_space<smem>>
    %325 = vector.extract_strided_slice %303 {offsets = [0, 4], sizes = [1, 256], strides = [1, 1]} : vector<1x262xf32> to vector<1x256xf32>
    %326 = vector.broadcast %324 : f32 to vector<1x256xf32>
    %327 = arith.mulf %326, %325 : vector<1x256xf32>
    %328 = arith.addf %291, %327 : vector<1x256xf32>
    %c61 = arith.constant 61 : index
    %329 = memref.load %arg1[%c61] : memref<98xf32, #tpu.memory_space<smem>>
    %330 = vector.extract_strided_slice %303 {offsets = [0, 5], sizes = [1, 256], strides = [1, 1]} : vector<1x262xf32> to vector<1x256xf32>
    %331 = vector.broadcast %329 : f32 to vector<1x256xf32>
    %332 = arith.mulf %331, %330 : vector<1x256xf32>
    %333 = arith.addf %296, %332 : vector<1x256xf32>
    %c62 = arith.constant 62 : index
    %334 = memref.load %arg1[%c62] : memref<98xf32, #tpu.memory_space<smem>>
    %335 = vector.extract_strided_slice %303 {offsets = [0, 6], sizes = [1, 256], strides = [1, 1]} : vector<1x262xf32> to vector<1x256xf32>
    %336 = vector.broadcast %334 : f32 to vector<1x256xf32>
    %337 = arith.mulf %336, %335 : vector<1x256xf32>
    %338 = arith.addf %301, %337 : vector<1x256xf32>
    %c1_37 = arith.constant 1 : index
    %c0_38 = arith.constant 0 : index
    %c109_39 = arith.constant 109 : index
    %339 = vector.load %arg5[%c1_37, %c0_38, %c109_39] : memref<2x1x512xf32, #tpu.memory_space<vmem>>, vector<1x1x262xf32>
    %340 = vector.shape_cast %339 : vector<1x1x262xf32> to vector<1x262xf32>
    %c63 = arith.constant 63 : index
    %341 = memref.load %arg1[%c63] : memref<98xf32, #tpu.memory_space<smem>>
    %342 = vector.extract_strided_slice %340 {offsets = [0, 0], sizes = [1, 256], strides = [1, 1]} : vector<1x262xf32> to vector<1x256xf32>
    %343 = vector.broadcast %341 : f32 to vector<1x256xf32>
    %344 = arith.mulf %343, %342 : vector<1x256xf32>
    %345 = arith.addf %308, %344 : vector<1x256xf32>
    %c64 = arith.constant 64 : index
    %346 = memref.load %arg1[%c64] : memref<98xf32, #tpu.memory_space<smem>>
    %347 = vector.extract_strided_slice %340 {offsets = [0, 1], sizes = [1, 256], strides = [1, 1]} : vector<1x262xf32> to vector<1x256xf32>
    %348 = vector.broadcast %346 : f32 to vector<1x256xf32>
    %349 = arith.mulf %348, %347 : vector<1x256xf32>
    %350 = arith.addf %313, %349 : vector<1x256xf32>
    %c65 = arith.constant 65 : index
    %351 = memref.load %arg1[%c65] : memref<98xf32, #tpu.memory_space<smem>>
    %352 = vector.extract_strided_slice %340 {offsets = [0, 2], sizes = [1, 256], strides = [1, 1]} : vector<1x262xf32> to vector<1x256xf32>
    %353 = vector.broadcast %351 : f32 to vector<1x256xf32>
    %354 = arith.mulf %353, %352 : vector<1x256xf32>
    %355 = arith.addf %318, %354 : vector<1x256xf32>
    %c66 = arith.constant 66 : index
    %356 = memref.load %arg1[%c66] : memref<98xf32, #tpu.memory_space<smem>>
    %357 = vector.extract_strided_slice %340 {offsets = [0, 3], sizes = [1, 256], strides = [1, 1]} : vector<1x262xf32> to vector<1x256xf32>
    %358 = vector.broadcast %356 : f32 to vector<1x256xf32>
    %359 = arith.mulf %358, %357 : vector<1x256xf32>
    %360 = arith.addf %323, %359 : vector<1x256xf32>
    %c67 = arith.constant 67 : index
    %361 = memref.load %arg1[%c67] : memref<98xf32, #tpu.memory_space<smem>>
    %362 = vector.extract_strided_slice %340 {offsets = [0, 4], sizes = [1, 256], strides = [1, 1]} : vector<1x262xf32> to vector<1x256xf32>
    %363 = vector.broadcast %361 : f32 to vector<1x256xf32>
    %364 = arith.mulf %363, %362 : vector<1x256xf32>
    %365 = arith.addf %328, %364 : vector<1x256xf32>
    %c68 = arith.constant 68 : index
    %366 = memref.load %arg1[%c68] : memref<98xf32, #tpu.memory_space<smem>>
    %367 = vector.extract_strided_slice %340 {offsets = [0, 5], sizes = [1, 256], strides = [1, 1]} : vector<1x262xf32> to vector<1x256xf32>
    %368 = vector.broadcast %366 : f32 to vector<1x256xf32>
    %369 = arith.mulf %368, %367 : vector<1x256xf32>
    %370 = arith.addf %333, %369 : vector<1x256xf32>
    %c69 = arith.constant 69 : index
    %371 = memref.load %arg1[%c69] : memref<98xf32, #tpu.memory_space<smem>>
    %372 = vector.extract_strided_slice %340 {offsets = [0, 6], sizes = [1, 256], strides = [1, 1]} : vector<1x262xf32> to vector<1x256xf32>
    %373 = vector.broadcast %371 : f32 to vector<1x256xf32>
    %374 = arith.mulf %373, %372 : vector<1x256xf32>
    %375 = arith.addf %338, %374 : vector<1x256xf32>
    %c1_40 = arith.constant 1 : index
    %c0_41 = arith.constant 0 : index
    %c125_42 = arith.constant 125 : index
    %376 = vector.load %arg5[%c1_40, %c0_41, %c125_42] : memref<2x1x512xf32, #tpu.memory_space<vmem>>, vector<1x1x262xf32>
    %377 = vector.shape_cast %376 : vector<1x1x262xf32> to vector<1x262xf32>
    %c70 = arith.constant 70 : index
    %378 = memref.load %arg1[%c70] : memref<98xf32, #tpu.memory_space<smem>>
    %379 = vector.extract_strided_slice %377 {offsets = [0, 0], sizes = [1, 256], strides = [1, 1]} : vector<1x262xf32> to vector<1x256xf32>
    %380 = vector.broadcast %378 : f32 to vector<1x256xf32>
    %381 = arith.mulf %380, %379 : vector<1x256xf32>
    %382 = arith.addf %345, %381 : vector<1x256xf32>
    %c71 = arith.constant 71 : index
    %383 = memref.load %arg1[%c71] : memref<98xf32, #tpu.memory_space<smem>>
    %384 = vector.extract_strided_slice %377 {offsets = [0, 1], sizes = [1, 256], strides = [1, 1]} : vector<1x262xf32> to vector<1x256xf32>
    %385 = vector.broadcast %383 : f32 to vector<1x256xf32>
    %386 = arith.mulf %385, %384 : vector<1x256xf32>
    %387 = arith.addf %350, %386 : vector<1x256xf32>
    %c72 = arith.constant 72 : index
    %388 = memref.load %arg1[%c72] : memref<98xf32, #tpu.memory_space<smem>>
    %389 = vector.extract_strided_slice %377 {offsets = [0, 2], sizes = [1, 256], strides = [1, 1]} : vector<1x262xf32> to vector<1x256xf32>
    %390 = vector.broadcast %388 : f32 to vector<1x256xf32>
    %391 = arith.mulf %390, %389 : vector<1x256xf32>
    %392 = arith.addf %355, %391 : vector<1x256xf32>
    %c73 = arith.constant 73 : index
    %393 = memref.load %arg1[%c73] : memref<98xf32, #tpu.memory_space<smem>>
    %394 = vector.extract_strided_slice %377 {offsets = [0, 3], sizes = [1, 256], strides = [1, 1]} : vector<1x262xf32> to vector<1x256xf32>
    %395 = vector.broadcast %393 : f32 to vector<1x256xf32>
    %396 = arith.mulf %395, %394 : vector<1x256xf32>
    %397 = arith.addf %360, %396 : vector<1x256xf32>
    %c74 = arith.constant 74 : index
    %398 = memref.load %arg1[%c74] : memref<98xf32, #tpu.memory_space<smem>>
    %399 = vector.extract_strided_slice %377 {offsets = [0, 4], sizes = [1, 256], strides = [1, 1]} : vector<1x262xf32> to vector<1x256xf32>
    %400 = vector.broadcast %398 : f32 to vector<1x256xf32>
    %401 = arith.mulf %400, %399 : vector<1x256xf32>
    %402 = arith.addf %365, %401 : vector<1x256xf32>
    %c75 = arith.constant 75 : index
    %403 = memref.load %arg1[%c75] : memref<98xf32, #tpu.memory_space<smem>>
    %404 = vector.extract_strided_slice %377 {offsets = [0, 5], sizes = [1, 256], strides = [1, 1]} : vector<1x262xf32> to vector<1x256xf32>
    %405 = vector.broadcast %403 : f32 to vector<1x256xf32>
    %406 = arith.mulf %405, %404 : vector<1x256xf32>
    %407 = arith.addf %370, %406 : vector<1x256xf32>
    %c76 = arith.constant 76 : index
    %408 = memref.load %arg1[%c76] : memref<98xf32, #tpu.memory_space<smem>>
    %409 = vector.extract_strided_slice %377 {offsets = [0, 6], sizes = [1, 256], strides = [1, 1]} : vector<1x262xf32> to vector<1x256xf32>
    %410 = vector.broadcast %408 : f32 to vector<1x256xf32>
    %411 = arith.mulf %410, %409 : vector<1x256xf32>
    %412 = arith.addf %375, %411 : vector<1x256xf32>
    %c1_43 = arith.constant 1 : index
    %c0_44 = arith.constant 0 : index
    %c141_45 = arith.constant 141 : index
    %413 = vector.load %arg5[%c1_43, %c0_44, %c141_45] : memref<2x1x512xf32, #tpu.memory_space<vmem>>, vector<1x1x262xf32>
    %414 = vector.shape_cast %413 : vector<1x1x262xf32> to vector<1x262xf32>
    %c77_46 = arith.constant 77 : index
    %415 = memref.load %arg1[%c77_46] : memref<98xf32, #tpu.memory_space<smem>>
    %416 = vector.extract_strided_slice %414 {offsets = [0, 0], sizes = [1, 256], strides = [1, 1]} : vector<1x262xf32> to vector<1x256xf32>
    %417 = vector.broadcast %415 : f32 to vector<1x256xf32>
    %418 = arith.mulf %417, %416 : vector<1x256xf32>
    %419 = arith.addf %382, %418 : vector<1x256xf32>
    %c78 = arith.constant 78 : index
    %420 = memref.load %arg1[%c78] : memref<98xf32, #tpu.memory_space<smem>>
    %421 = vector.extract_strided_slice %414 {offsets = [0, 1], sizes = [1, 256], strides = [1, 1]} : vector<1x262xf32> to vector<1x256xf32>
    %422 = vector.broadcast %420 : f32 to vector<1x256xf32>
    %423 = arith.mulf %422, %421 : vector<1x256xf32>
    %424 = arith.addf %387, %423 : vector<1x256xf32>
    %c79 = arith.constant 79 : index
    %425 = memref.load %arg1[%c79] : memref<98xf32, #tpu.memory_space<smem>>
    %426 = vector.extract_strided_slice %414 {offsets = [0, 2], sizes = [1, 256], strides = [1, 1]} : vector<1x262xf32> to vector<1x256xf32>
    %427 = vector.broadcast %425 : f32 to vector<1x256xf32>
    %428 = arith.mulf %427, %426 : vector<1x256xf32>
    %429 = arith.addf %392, %428 : vector<1x256xf32>
    %c80 = arith.constant 80 : index
    %430 = memref.load %arg1[%c80] : memref<98xf32, #tpu.memory_space<smem>>
    %431 = vector.extract_strided_slice %414 {offsets = [0, 3], sizes = [1, 256], strides = [1, 1]} : vector<1x262xf32> to vector<1x256xf32>
    %432 = vector.broadcast %430 : f32 to vector<1x256xf32>
    %433 = arith.mulf %432, %431 : vector<1x256xf32>
    %434 = arith.addf %397, %433 : vector<1x256xf32>
    %c81 = arith.constant 81 : index
    %435 = memref.load %arg1[%c81] : memref<98xf32, #tpu.memory_space<smem>>
    %436 = vector.extract_strided_slice %414 {offsets = [0, 4], sizes = [1, 256], strides = [1, 1]} : vector<1x262xf32> to vector<1x256xf32>
    %437 = vector.broadcast %435 : f32 to vector<1x256xf32>
    %438 = arith.mulf %437, %436 : vector<1x256xf32>
    %439 = arith.addf %402, %438 : vector<1x256xf32>
    %c82 = arith.constant 82 : index
    %440 = memref.load %arg1[%c82] : memref<98xf32, #tpu.memory_space<smem>>
    %441 = vector.extract_strided_slice %414 {offsets = [0, 5], sizes = [1, 256], strides = [1, 1]} : vector<1x262xf32> to vector<1x256xf32>
    %442 = vector.broadcast %440 : f32 to vector<1x256xf32>
    %443 = arith.mulf %442, %441 : vector<1x256xf32>
    %444 = arith.addf %407, %443 : vector<1x256xf32>
    %c83 = arith.constant 83 : index
    %445 = memref.load %arg1[%c83] : memref<98xf32, #tpu.memory_space<smem>>
    %446 = vector.extract_strided_slice %414 {offsets = [0, 6], sizes = [1, 256], strides = [1, 1]} : vector<1x262xf32> to vector<1x256xf32>
    %447 = vector.broadcast %445 : f32 to vector<1x256xf32>
    %448 = arith.mulf %447, %446 : vector<1x256xf32>
    %449 = arith.addf %412, %448 : vector<1x256xf32>
    %c1_47 = arith.constant 1 : index
    %c0_48 = arith.constant 0 : index
    %c157_49 = arith.constant 157 : index
    %450 = vector.load %arg5[%c1_47, %c0_48, %c157_49] : memref<2x1x512xf32, #tpu.memory_space<vmem>>, vector<1x1x262xf32>
    %451 = vector.shape_cast %450 : vector<1x1x262xf32> to vector<1x262xf32>
    %c84 = arith.constant 84 : index
    %452 = memref.load %arg1[%c84] : memref<98xf32, #tpu.memory_space<smem>>
    %453 = vector.extract_strided_slice %451 {offsets = [0, 0], sizes = [1, 256], strides = [1, 1]} : vector<1x262xf32> to vector<1x256xf32>
    %454 = vector.broadcast %452 : f32 to vector<1x256xf32>
    %455 = arith.mulf %454, %453 : vector<1x256xf32>
    %456 = arith.addf %419, %455 : vector<1x256xf32>
    %c85 = arith.constant 85 : index
    %457 = memref.load %arg1[%c85] : memref<98xf32, #tpu.memory_space<smem>>
    %458 = vector.extract_strided_slice %451 {offsets = [0, 1], sizes = [1, 256], strides = [1, 1]} : vector<1x262xf32> to vector<1x256xf32>
    %459 = vector.broadcast %457 : f32 to vector<1x256xf32>
    %460 = arith.mulf %459, %458 : vector<1x256xf32>
    %461 = arith.addf %424, %460 : vector<1x256xf32>
    %c86 = arith.constant 86 : index
    %462 = memref.load %arg1[%c86] : memref<98xf32, #tpu.memory_space<smem>>
    %463 = vector.extract_strided_slice %451 {offsets = [0, 2], sizes = [1, 256], strides = [1, 1]} : vector<1x262xf32> to vector<1x256xf32>
    %464 = vector.broadcast %462 : f32 to vector<1x256xf32>
    %465 = arith.mulf %464, %463 : vector<1x256xf32>
    %466 = arith.addf %429, %465 : vector<1x256xf32>
    %c87 = arith.constant 87 : index
    %467 = memref.load %arg1[%c87] : memref<98xf32, #tpu.memory_space<smem>>
    %468 = vector.extract_strided_slice %451 {offsets = [0, 3], sizes = [1, 256], strides = [1, 1]} : vector<1x262xf32> to vector<1x256xf32>
    %469 = vector.broadcast %467 : f32 to vector<1x256xf32>
    %470 = arith.mulf %469, %468 : vector<1x256xf32>
    %471 = arith.addf %434, %470 : vector<1x256xf32>
    %c88 = arith.constant 88 : index
    %472 = memref.load %arg1[%c88] : memref<98xf32, #tpu.memory_space<smem>>
    %473 = vector.extract_strided_slice %451 {offsets = [0, 4], sizes = [1, 256], strides = [1, 1]} : vector<1x262xf32> to vector<1x256xf32>
    %474 = vector.broadcast %472 : f32 to vector<1x256xf32>
    %475 = arith.mulf %474, %473 : vector<1x256xf32>
    %476 = arith.addf %439, %475 : vector<1x256xf32>
    %c89 = arith.constant 89 : index
    %477 = memref.load %arg1[%c89] : memref<98xf32, #tpu.memory_space<smem>>
    %478 = vector.extract_strided_slice %451 {offsets = [0, 5], sizes = [1, 256], strides = [1, 1]} : vector<1x262xf32> to vector<1x256xf32>
    %479 = vector.broadcast %477 : f32 to vector<1x256xf32>
    %480 = arith.mulf %479, %478 : vector<1x256xf32>
    %481 = arith.addf %444, %480 : vector<1x256xf32>
    %c90 = arith.constant 90 : index
    %482 = memref.load %arg1[%c90] : memref<98xf32, #tpu.memory_space<smem>>
    %483 = vector.extract_strided_slice %451 {offsets = [0, 6], sizes = [1, 256], strides = [1, 1]} : vector<1x262xf32> to vector<1x256xf32>
    %484 = vector.broadcast %482 : f32 to vector<1x256xf32>
    %485 = arith.mulf %484, %483 : vector<1x256xf32>
    %486 = arith.addf %449, %485 : vector<1x256xf32>
    %c1_50 = arith.constant 1 : index
    %c0_51 = arith.constant 0 : index
    %c173_52 = arith.constant 173 : index
    %487 = vector.load %arg5[%c1_50, %c0_51, %c173_52] : memref<2x1x512xf32, #tpu.memory_space<vmem>>, vector<1x1x262xf32>
    %488 = vector.shape_cast %487 : vector<1x1x262xf32> to vector<1x262xf32>
    %c91 = arith.constant 91 : index
    %489 = memref.load %arg1[%c91] : memref<98xf32, #tpu.memory_space<smem>>
    %490 = vector.extract_strided_slice %488 {offsets = [0, 0], sizes = [1, 256], strides = [1, 1]} : vector<1x262xf32> to vector<1x256xf32>
    %491 = vector.broadcast %489 : f32 to vector<1x256xf32>
    %492 = arith.mulf %491, %490 : vector<1x256xf32>
    %493 = arith.addf %456, %492 : vector<1x256xf32>
    %c92 = arith.constant 92 : index
    %494 = memref.load %arg1[%c92] : memref<98xf32, #tpu.memory_space<smem>>
    %495 = vector.extract_strided_slice %488 {offsets = [0, 1], sizes = [1, 256], strides = [1, 1]} : vector<1x262xf32> to vector<1x256xf32>
    %496 = vector.broadcast %494 : f32 to vector<1x256xf32>
    %497 = arith.mulf %496, %495 : vector<1x256xf32>
    %498 = arith.addf %461, %497 : vector<1x256xf32>
    %c93_53 = arith.constant 93 : index
    %499 = memref.load %arg1[%c93_53] : memref<98xf32, #tpu.memory_space<smem>>
    %500 = vector.extract_strided_slice %488 {offsets = [0, 2], sizes = [1, 256], strides = [1, 1]} : vector<1x262xf32> to vector<1x256xf32>
    %501 = vector.broadcast %499 : f32 to vector<1x256xf32>
    %502 = arith.mulf %501, %500 : vector<1x256xf32>
    %503 = arith.addf %466, %502 : vector<1x256xf32>
    %c94 = arith.constant 94 : index
    %504 = memref.load %arg1[%c94] : memref<98xf32, #tpu.memory_space<smem>>
    %505 = vector.extract_strided_slice %488 {offsets = [0, 3], sizes = [1, 256], strides = [1, 1]} : vector<1x262xf32> to vector<1x256xf32>
    %506 = vector.broadcast %504 : f32 to vector<1x256xf32>
    %507 = arith.mulf %506, %505 : vector<1x256xf32>
    %508 = arith.addf %471, %507 : vector<1x256xf32>
    %c95 = arith.constant 95 : index
    %509 = memref.load %arg1[%c95] : memref<98xf32, #tpu.memory_space<smem>>
    %510 = vector.extract_strided_slice %488 {offsets = [0, 4], sizes = [1, 256], strides = [1, 1]} : vector<1x262xf32> to vector<1x256xf32>
    %511 = vector.broadcast %509 : f32 to vector<1x256xf32>
    %512 = arith.mulf %511, %510 : vector<1x256xf32>
    %513 = arith.addf %476, %512 : vector<1x256xf32>
    %c96 = arith.constant 96 : index
    %514 = memref.load %arg1[%c96] : memref<98xf32, #tpu.memory_space<smem>>
    %515 = vector.extract_strided_slice %488 {offsets = [0, 5], sizes = [1, 256], strides = [1, 1]} : vector<1x262xf32> to vector<1x256xf32>
    %516 = vector.broadcast %514 : f32 to vector<1x256xf32>
    %517 = arith.mulf %516, %515 : vector<1x256xf32>
    %518 = arith.addf %481, %517 : vector<1x256xf32>
    %c97 = arith.constant 97 : index
    %519 = memref.load %arg1[%c97] : memref<98xf32, #tpu.memory_space<smem>>
    %520 = vector.extract_strided_slice %488 {offsets = [0, 6], sizes = [1, 256], strides = [1, 1]} : vector<1x262xf32> to vector<1x256xf32>
    %521 = vector.broadcast %519 : f32 to vector<1x256xf32>
    %522 = arith.mulf %521, %520 : vector<1x256xf32>
    %523 = arith.addf %486, %522 : vector<1x256xf32>
    %524 = vector.extract_strided_slice %12 {offsets = [0, 0], sizes = [1, 256], strides = [1, 1]} : vector<7x256xf32> to vector<1x256xf32>
    %525 = arith.mulf %493, %524 : vector<1x256xf32>
    %526 = vector.extract_strided_slice %12 {offsets = [1, 0], sizes = [1, 256], strides = [1, 1]} : vector<7x256xf32> to vector<1x256xf32>
    %527 = arith.mulf %498, %526 : vector<1x256xf32>
    %528 = vector.extract_strided_slice %12 {offsets = [2, 0], sizes = [1, 256], strides = [1, 1]} : vector<7x256xf32> to vector<1x256xf32>
    %529 = arith.mulf %503, %528 : vector<1x256xf32>
    %530 = vector.extract_strided_slice %12 {offsets = [4, 0], sizes = [1, 256], strides = [1, 1]} : vector<7x256xf32> to vector<1x256xf32>
    %531 = arith.mulf %513, %530 : vector<1x256xf32>
    %532 = vector.extract_strided_slice %12 {offsets = [5, 0], sizes = [1, 256], strides = [1, 1]} : vector<7x256xf32> to vector<1x256xf32>
    %533 = arith.mulf %518, %532 : vector<1x256xf32>
    %534 = vector.extract_strided_slice %12 {offsets = [6, 0], sizes = [1, 256], strides = [1, 1]} : vector<7x256xf32> to vector<1x256xf32>
    %535 = arith.mulf %523, %534 : vector<1x256xf32>
    %536 = arith.addf %525, %527 : vector<1x256xf32>
    %537 = arith.addf %529, %508 : vector<1x256xf32>
    %538 = arith.addf %531, %533 : vector<1x256xf32>
    %539 = arith.addf %536, %537 : vector<1x256xf32>
    %540 = arith.addf %538, %535 : vector<1x256xf32>
    %541 = arith.addf %539, %540 : vector<1x256xf32>
    %542 = arith.negf %541 : vector<1x256xf32>
    %543 = math.exp %542 : vector<1x256xf32>
    %cst_54 = arith.constant 1.000000e+00 : f32
    %544 = vector.broadcast %cst_54 : f32 to vector<1x256xf32>
    %545 = arith.addf %544, %543 : vector<1x256xf32>
    %546 = arith.divf %544, %545 : vector<1x256xf32>
    %547 = vector.shape_cast %546 : vector<1x256xf32> to vector<1x1x256xf32>
    %548 = vector.broadcast %547 : vector<1x1x256xf32> to vector<1x4x256xf32>
    %549 = arith.mulf %0, %548 : vector<1x4x256xf32>
    %c0_55 = arith.constant 0 : index
    %c0_56 = arith.constant 0 : index
    %c0_57 = arith.constant 0 : index
    %550 = vector.load %arg4[%c0_55, %c0_56, %c0_57] : memref<1x4x256xf32, #tpu.memory_space<vmem>>, vector<1x4x256xf32>
    tpu.vector_store %arg4[%c0_55, %c0_56, %c0_57], %549 {strides = array<i32>} : memref<1x4x256xf32, #tpu.memory_space<vmem>>, vector<1x4x256xf32>,
    return
  }
  func.func @transform_0(%arg0: i32) -> i32 {
    %c0_i32 = arith.constant 0 : i32
    %c0_i32_0 = arith.constant 0 : i32
    return %c0_i32 : i32
  }
  func.func @transform_1(%arg0: i32) -> (i32, i32) {
    %c0_i32 = arith.constant 0 : i32
    %c0_i32_0 = arith.constant 0 : i32
    %c0_i32_1 = arith.constant 0 : i32
    return %c0_i32, %c0_i32_0 : i32, i32
  }
  func.func @transform_2(%arg0: i32) -> (i32, i32, i32) {
    %c0_i32 = arith.constant 0 : i32
    %c0_i32_0 = arith.constant 0 : i32
    %c0_i32_1 = arith.constant 0 : i32
    return %arg0, %c0_i32, %c0_i32_0 : i32, i32, i32
  }
  func.func @transform_3(%arg0: i32) -> (i32, i32, i32) {
    %c0_i32 = arith.constant 0 : i32
    %c0_i32_0 = arith.constant 0 : i32
    %c0_i32_1 = arith.constant 0 : i32
    return %arg0, %c0_i32, %c0_i32_0 : i32, i32, i32
  }
}

</mosaic_0001>

<bundles_post_ra>
// kernel: tpu_custom_call.1
= control target key start
LH: loop header
LB: loop body
LE: loop exit
PB: predicated region body
PF: predicated region fallthrough
CT: control target
= control target key end

     0   :  { %8 = vsyncpa [#allocation6], 0  ;;  %s2854_s0 = inlined_call_operand.hbm [shape: f32[98], index: 0, kind: input, shape index: {}]   ;;  %s2855_s1 = inlined_call_operand.hbm [shape: f32[7,256], index: 1, kind: input, shape index: {}]   ;;  %s2856_s2 = inlined_call_operand.hbm [shape: f32[2,4,256], index: 2, kind: input, shape index: {}]   ;;  %s2857_s3 = inlined_call_operand.hbm [shape: f32[2,4,256], index: 3, kind: output, shape index: {}]  }
   0x1   :  { %9 = vsyncpa [#allocation4], 0 }
   0x2   :  { %10 = vsyncpa [#allocation9], 0 }
   0x3   :  { %12 = vsyncpa [#allocation9 + $0x1], 0 }
   0x4   :  { %13 = vsyncpa [#allocation5], 0 }
   0x5   :  { %15 = vsyncpa [#allocation5 + $0x1], 0  ;;  %s1927_s12 = smov 0   ;;  %s1929_s13 = smov 0  }
   0x6   :  { %s1931_s14 = smov 0   ;;  %s1933_s15 = smov 0  }
   0x7 LB: > { %s1948_s16 = sadd.s32 4294967295, %s1882_s15   ;;  %s1518_s17 = sadd.s32 4294967294, %s1882_s15   ;;  %s1882_s15 = sphi %s1933_s15, %s2885_s15   ;;  %s1878_s14 = sphi %s1931_s14, %s2884_s14   ;;  %s1874_s13 = sphi %s1929_s13, %s2883_s13   ;;  %s1870_s12 = sphi %s1927_s12, %s2882_s12  }
   0x8   : > { %p83_p0 = scmp.ne.s32.totalorder %s1874_s13, %s1870_s12  ;;  %p2858_p1 = scmp.eq.s32.totalorder %s1948_s16, 0 }
   0x9   : > { %p113_p3 = scmp.eq.s32.totalorder %s1518_s17, 1  ;;  %p1519_p5 = scmp.ge.s32.totalorder %s1882_s15, 1 }
   0xa   : > { %p1957_p4 = por %p2858_p1, %p83_p0  ;;  %p120_p7 = scmp.lt.s32.totalorder %s1882_s15, 3 }
   0xb   : > { %p1962_p6 = por %p113_p3, %p83_p0  ;;  %s1884_s21 = smov [#allocation7]  }
   0xc   : > { %s2864_s18 = scalar_select %p1957_p4, 1, 0 }
   0xd   : > { %s2865_s19 = scalar_select %p1962_p6, 1, 0 }
   0xe   : > { %p1967_p8 = pnand %p1519_p5, %p120_p7  ;;  %s142_s22 = sshll.u32 %s1884_s21, 4  ;;  %s1974_s22 = int_to_ptr.vmem [resolvable:$true] %s142_s22 }
   0xf   : > { %s1983_s24 = sadd.s32 1, %s1882_s15   ;;  %s70_s26 = sadd.s32 1, %s1878_s14 }
  0x10   : > { %p1648_p10 = pneg %p1967_p8  ;;  %s67_s25 = ssub.s32 %s1882_s15, %s1983_s24 }
  0x11   : > { %p1988_p12 = scmp.eq.s32.totalorder %s67_s25, 0  ;;  %s1737_s30 = scalar_lea.hbm %s2854_s0, 16 }
  0x12   : > { %p1978_p11 = pnand %p1648_p10, %p2858_p1  ;;  %p1738_p13 = scmp.ne.s32.totalorder %s2854_s0, %s1737_s30 }
  0x13   : > { %p1744_p7 = scmp.lt.u32.totalorder %s1737_s30, %s2854_s0 }
  0x14   : > { %p1739_p0 = pneg %p1978_p11 }
  0x16   : > { %p1740_p3 = pnand %p1739_p0, %p1738_p13 }
  0x18   : > { %p1741_p5 = pneg %p1740_p3 }
  0x1a   : > { %p1746_p10 = pnand %p1744_p7, %p1741_p5 }
  0x1c   : > { %1749 = shalt.err (!%p1746_p10)
}
  0x1d   : > { %s1885_s8 = smov [#allocation3]   ;;  %s1750_s21 = scalar_lea.hbm %s2855_s1, 256 }
  0x1e   : > { %1651 = dma.hbm_to_smem (!%p1978_p11), %s2854_s0, 16, %s1885_s8, [#allocation6]  }
  0x1f   : > { %p1751_p13 = scmp.ne.s32.totalorder %s2855_s1, %s1750_s21  ;;  %p1757_p7 = scmp.lt.u32.totalorder %s1750_s21, %s2855_s1 }
  0x21   : > { %p1753_p3 = pnand %p1751_p13, %p1739_p0 }
  0x23   : > { %p1754_p5 = pneg %p1753_p3 }
  0x25   : > { %p1759_p10 = pnand %p1757_p7, %p1754_p5 }
  0x27   : > { %1762 = shalt.err (!%p1759_p10)
}
  0x28   : > { %s1763_s4 = scalar_lea.vmem %s1974_s22, 256  ;;  %p1771_p6 = scmp.lt.s32.totalorder %s1974_s22, %s1974_s22 }
  0x29   : > { %p1764_p9 = scmp.ne.s32.totalorder %s1974_s22, %s1763_s4  ;;  %p1772_p13 = scmp.lt.s32.totalorder %s1763_s4, %s1763_s4 }
  0x2b   : > { %p1766_p1 = pnand %p1764_p9, %p1739_p0  ;;  %p1773_p3 = por %p1772_p13, %p1771_p6 }
  0x2d   : > { %p1767_p2 = pneg %p1766_p1 }
  0x2f   : > { %p1774_p4 = pnand %p1773_p3, %p1767_p2 }
  0x31   : > { %1777 = shalt.err (!%p1774_p4)
}
  0x32   : > { %1654 = dma.hbm_to_vmem [thread:$0]  (!%p1978_p11), %s2855_s1, 256, %s1974_s22, [#allocation4]  }
  0x33   : > { %s2041_s7 = scalar_select %p1988_p12, %s1878_s14, %s70_s26  }
  0x34   : > { %p77_p1 = scmp.ne.s32.totalorder %s1878_s14, %s1874_s13  ;;  %p78_p2 = scmp.eq.s32.totalorder %s1882_s15, 0 }
  0x35   : > { %p1665_p4 = scmp.lt.s32.totalorder %s1882_s15, 2  ;;  %s153_s23 = sand.u32 1, %s1878_s14  }
  0x36   : > { %p79_p6 = por %p78_p2, %p77_p1  ;;  %p2869_p9 = scmp.eq.s32.totalorder %s1948_s16, 1 }
  0x37   : > { %s1523_s9 = sshll.u32 %s153_s23, 3  ;;  %s1634_s10 = sshll.u32 %s1882_s15, 7 }
  0x38   : > { %p2050_p0 = por %p2869_p9, %p77_p1  ;;  %s2058_s22 = scalar_lea.hbm %s2856_s2, %s1634_s10 }
  0x39   : > { %s157_s26 = scalar_lea.vmem [#allocation8], %s1523_s9  ;;  %p2062_p11 = pnand %p1665_p4, %p79_p6 }
  0x3a   : > { %s2870_s8 = scalar_select %p2050_p0, 1, 0 }
  0x3b   : > { %s165_s27 = sshll.u32 %s157_s26, 4  ;;  %s154_s25 = scalar_lea.sflag [#allocation9], %s153_s23  ;;  %s2060_s27 = int_to_ptr.vmem [resolvable:$true] %s165_s27 }
  0x3c   : > { %s1778_s28 = scalar_lea.hbm %s2058_s22, 128  ;;  %p1780_p5 = pneg %p2062_p11 }
  0x3d   : > { %p1779_p12 = scmp.ne.s32.totalorder %s2058_s22, %s1778_s28  ;;  %s1783_s4 = scalar_lea.hbm %s2856_s2, 256 }
  0x3e   : > { %p1784_p13 = scmp.lt.u32.totalorder %s2058_s22, %s2856_s2  ;;  %p1785_p3 = scmp.lt.u32.totalorder %s1783_s4, %s1778_s28 }
  0x3f   : > { %p1781_p7 = pnand %p1780_p5, %p1779_p12  ;;  %p1787_p2 = scmp.lt.u32.totalorder %s1778_s28, %s2058_s22 }
  0x40   : > { %p1786_p1 = por %p1785_p3, %p1784_p13 }
  0x41   : > { %p1782_p10 = pneg %p1781_p7 }
  0x42   : > { %p1788_p4 = por %p1787_p2, %p1786_p1 }
  0x44   : > { %p1789_p6 = pnand %p1788_p4, %p1782_p10 }
  0x46   : > { %1792 = shalt.err (!%p1789_p6)
}
  0x47   : > { %s1793_s23 = scalar_lea.vmem %s2060_s27, 128  ;;  %s1886_s9 = smov [#allocation8]  }
  0x48   : > { %p1794_p9 = scmp.ne.s32.totalorder %s2060_s27, %s1793_s23  ;;  %s1798_s10 = sshll.u32 %s1886_s9, 4  ;;  %s1799_s10 = int_to_ptr.vmem [resolvable:$false] %s1798_s10 }
  0x49   : > { %s1800_s11 = scalar_lea.vmem %s1799_s10, 256  ;;  %p1801_p0 = scmp.lt.s32.totalorder %s2060_s27, %s1799_s10 }
  0x4a   : > { %p1796_p12 = pnand %p1794_p9, %p1780_p5  ;;  %p1802_p13 = scmp.lt.s32.totalorder %s1800_s11, %s1793_s23 }
  0x4c   : > { %p1797_p7 = pneg %p1796_p12  ;;  %p1803_p3 = por %p1802_p13, %p1801_p0 }
  0x4e   : > { %p1804_p1 = pnand %p1803_p3, %p1797_p7 }
  0x50   : > { %1807 = shalt.err (!%p1804_p1)
}
  0x51   : > { %1658 = dma.hbm_to_vmem [thread:$0]  (!%p2062_p11), %s2058_s22, 128, %s2060_s27, %s154_s25  }
  0x52   : > { %174 = sbr.rel (%p1967_p8) target bundleno = 800 (0x320), region = 32  ;;  %p2872_p5 = scmp.eq.s32.totalorder (!%p1967_p8), %s1948_s16, 0 }
  0x59   : > { %1853 = dma.done.wait (%p2872_p5), [#allocation6], 16   ;;  %p2873_p10 = pmov %p2872_p5 }
  0x5a   : > { %p2874_p2 = pmov %p2872_p5 }
  0x5b   : > { %1855 = vsyncadd (%p2873_p10), [#allocation6], 4294967280 }
  0x5c   : > { %1857 = dma.done.wait (%p2874_p2), [#allocation4], 256   ;;  %p2875_p0 = pmov %p2874_p2 }
  0x5d   : > { %s2102_s17 = sand.u32 1, %s1874_s13   ;;  %p2876_p8 = scmp.ne.s32.totalorder %s2864_s18, 0 }
  0x5e   : > { %1859 = vsyncadd (%p2875_p0), [#allocation4], 4294967040  ;;  %s2861_s20 = sshll.u32 %s2102_s17, 3  ;;  %s185_s22 = scalar_lea.sflag [#allocation9], %s2102_s17 }
  0x5f   : > { %s2108_s26 = scalar_lea.vmem [#allocation8], %s2861_s20 }
  0x60   : > { %1861 = dma.done.wait (%p2876_p8), %s185_s22, 128  }
  0x61   : > { %1863 = vsyncadd (%p2876_p8), %s185_s22, 4294967168 }
  0x62   : > { %193 = sfence }
  0x63   : > { %v212_v0 = vld [vmem:[%s2108_s26] sm:$0xff]  ;;  %vm216_vm0 = vcmask 1043456   ;;  %v245_v1 = vlaneseq  ;;  %v1887_v7 = vmov 0.0   ;;  %v1888_v16 = vmov 1966171168   ;;  %s1540_s18 = sld [smem:[#allocation3 + $0xa]] }
  0x64   : > { %v214_v2 = vcombine.high %v212_v0, %v212_v0  ;;  %v231_v3 = vsel %vm216_vm0, %v212_v0, -inf  ;;  %v217_v4 = vsel %vm216_vm0, %v212_v0, 0.0  ;;  %v257_v17 = vunpack.c.l.s4 %v1888_v16  ;;  %s1549_s27 = sld [smem:[#allocation3 + $0x13]]  ;;  %s1542_s21 = sld [smem:[#allocation3 + $0xc]] }
  0x65   : > { %v232_v5 = vrot.slane %v231_v3, 4  ;;  %vm247_vm1 = vcmp.lt.s32.totalorder %v245_v1, 128  ;;  %v218_v8 = vrot.slane %v217_v4, 4  ;;  %v2119_v23 = vshrl.u32 %v245_v1, 7  ;;  %s2862_s25 = smov 126   ;;  %s1547_s28 = sld [smem:[#allocation3 + $0x11]] }
  0x66   : > { %v238_v6 = vsel %vm216_vm0, %v214_v2, -inf  ;;  %250 = vst.msk [vmem:[#allocation2 + $0x4] sm:$0x1] %vm247_vm1, %v1887_v7  ;;  %252 = vst.msk [vmem:[#allocation2 + $0x7] sm:$0x1] %vm247_vm1, %v1887_v7  ;;  %v224_v9 = vsel %vm216_vm0, %v214_v2, 0.0  ;;  %v258_v27 = vunpack.c.0.s8 %v257_v17 }
  0x67   : > { %249 = vst.msk [vmem:[#allocation2] sm:$0x1] %vm247_vm1, %v1887_v7  ;;  %251 = vst.msk [vmem:[#allocation2 + $0x3] sm:$0x1] %vm247_vm1, %v1887_v7  ;;  %v233_v10 = vmax.f32 %v231_v3, %v232_v5  ;;  %v239_v11 = vrot.slane %v238_v6, 4  ;;  %v225_v12 = vrot.slane %v224_v9, 4  ;;  %v219_v13 = vadd.f32 %v218_v8, %v217_v4 }
  0x68   : > { %v2122_v35 = vsub.s32 %v258_v27, %v2119_v23  ;;  %vm271_vm2 = vcmp.lt.s32.totalorder %v245_v1, 256  ;;  %s1543_s29 = sld [smem:[#allocation3 + $0xd]]  ;;  %s1890_s30 = smov 125   ;;  %vm529_vm3 = vcmask 1031168   ;;  %vm547_vm4 = vcmask 1022976  }
  0x69   : > { %v234_v14 = vrot.slane %v233_v10, 2  ;;  %v240_v15 = vmax.f32 %v238_v6, %v239_v11  ;;  %v226_v18 = vadd.f32 %v225_v12, %v224_v9  ;;  %v220_v19 = vrot.slane %v219_v13, 2  ;;  %s1561_s4 = sld [smem:[#allocation3 + $0x1f]]  ;;  %s1550_s5 = sld [smem:[#allocation3 + $0x14]] }
  0x6a   : > { %v350_v45 = vstv %s1540_s18  ;;  %v441_v48 = vstv %s1549_s27  ;;  %v370_v49 = vstv %s1542_s21  ;;  %s1891_s6 = smov 112   ;;  %s1892_s23 = smov 127   ;;  %vm325_vm5 = vcmask 916480  }
  0x6b   : > { %v235_v20 = vmax.f32 %v233_v10, %v234_v14  ;;  %v241_v21 = vrot.slane %v240_v15, 2  ;;  %v227_v22 = vrot.slane %v226_v18, 2  ;;  %v221_v24 = vadd.f32 %v220_v19, %v219_v13  ;;  %s1570_s9 = sld [smem:[#allocation3 + $0x28]]  ;;  %s1563_s10 = sld [smem:[#allocation3 + $0x21]] }
  0x6c   : > { %v421_v52 = vstv %s1547_s28  ;;  %s1893_s11 = smov 96   ;;  %s1571_s22 = sld [smem:[#allocation3 + $0x29]]  ;;  %vm396_vm6 = vcmask 785408   ;;  %vm468_vm7 = vcmask 654336   ;;  %vm511_vm8 = vcmask 1039360  }
  0x6d   : > { %v236_v25 = vrot.slane %v235_v20, 1  ;;  %v242_v26 = vmax.f32 %v240_v15, %v241_v21  ;;  %v228_v28 = vadd.f32 %v227_v22, %v226_v18  ;;  %v222_v29 = vrot.slane %v221_v24, 1  ;;  %s1564_s18 = sld [smem:[#allocation3 + $0x22]]  ;;  %s1575_s27 = sld [smem:[#allocation3 + $0x2d]] }
  0x6e   : > { %v380_v53 = vstv %s1543_s29  ;;  %s1554_s21 = sld [smem:[#allocation3 + $0x18]]  ;;  %s1894_s28 = smov 64   ;;  %vm567_vm9 = vcmask 523264   ;;  %vm638_vm10 = vcmask 392192   ;;  %vm709_vm11 = vcmask 261120  }
  0x6f   : > { %v237_v30 = vmax.f32 %v235_v20, %v236_v25  ;;  %v243_v31 = vrot.slane %v242_v26, 1  ;;  %v229_v32 = vrot.slane %v228_v28, 1  ;;  %v223_v33 = vadd.f32 %v222_v29, %v221_v24  ;;  %s1591_s29 = sld [smem:[#allocation3 + $0x3d]]  ;;  %s1610_s20 = sld [smem:[#allocation3 + $0x50]] }
  0x70   : > { %v592_v56 = vstv %s1561_s4  ;;  %v451_v57 = vstv %s1550_s5  ;;  %s1895_s4 = smov 48   ;;  %s1592_s5 = sld [smem:[#allocation3 + $0x3e]]  ;;  %vm537_vm12 = vcmask 670720   ;;  %vm555_vm13 = vcmask 678912  }
  0x71   : > { %v244_v34 = vmax.f32 %v242_v26, %v243_v31  ;;  %v230_v36 = vadd.f32 %v229_v32, %v228_v28  ;;  %v683_v61 = vstv %s1570_s9  ;;  %v612_v62 = vstv %s1563_s10  ;;  %s1577_s9 = sld [smem:[#allocation3 + $0x2f]]  ;;  %s1578_s10 = sld [smem:[#allocation3 + $0x30]] }
  0x72   : > { %v693_v1 = vstv %s1571_s22  ;;  %s1896_s22 = smov 32   ;;  %vm519_vm14 = vcmask 662528   ;;  %vm1280_vm15 = vcmask 637952   ;;  %vm1288_vm1 = vcmask 646144   ;;  %p2879_p4 = scmp.ne.s32.totalorder %s2870_s8, 0 }
  0x73   : > { %v276_v37 = vcombine.low %v237_v30, %v244_v34  ;;  %v255_v38 = vcombine.low %v223_v33, %v230_v36  ;;  %v622_v2 = vstv %s1564_s18  ;;  %v734_v6 = vstv %s1575_s27  ;;  %s1897_s18 = smov 80   ;;  %s1599_s27 = sld [smem:[#allocation3 + $0x45]] }
  0x74   : > { %v493_v7 = vstv %s1554_s21  ;;  %s1589_s21 = sld [smem:[#allocation3 + $0x3b]] }
  0x75   : > { %v283_v39 = vrot.slane %v276_v37, %v2122_v35  ;;  %v262_v40 = vrot.slane %v255_v38, %v2122_v35  ;;  %v853_v11 = vstv %s1591_s29  ;;  %s1603_s29 = sld [smem:[#allocation3 + $0x49]]  ;;  %v1066_v38 = vstv %s1610_s20  ;;  %s1538_s20 = sld [smem:[#allocation3 + $0x8]] }
  0x76   : > { %v863_v15 = vstv %s1592_s5  ;;  %s1612_s5 = sld [smem:[#allocation3 + $0x52]] }
  0x77   : > { %v290_v41 = vrot.slane %v283_v39, %v2122_v35  ;;  %v269_v42 = vrot.slane %v262_v40, %v2122_v35  ;;  %v754_v16 = vstv %s1577_s9  ;;  %v764_v19 = vstv %s1578_s10  ;;  %s1596_s9 = sld [smem:[#allocation3 + $0x42]]  ;;  %s1613_s10 = sld [smem:[#allocation3 + $0x53]] }
  0x79   : > { %293 = vst.msk [vmem:[#allocation2 + $0x5] sm:$0x3] %vm271_vm2, %v290_v41  ;;  %273 = vst.msk [vmem:[#allocation2 + $0x1] sm:$0x3] %vm271_vm2, %v269_v42  ;;  %v933_v21 = vstv %s1599_s27  ;;  %s1617_s27 = sld [smem:[#allocation3 + $0x57]]  ;;  %vm1265_vm2 = vcmask 629760  }
  0x7a   : > { %v833_v22 = vstv %s1589_s21  ;;  %s1619_s21 = sld [smem:[#allocation3 + $0x59]] }
  0x7b   : > { %v974_v27 = vstv %s1603_s29  ;;  %s1626_s29 = sld [smem:[#allocation3 + $0x60]] }
  0x7c   : > { %v1086_v31 = vstv %s1612_s5  ;;  %s1627_s5 = sld [smem:[#allocation3 + $0x61]] }
  0x7d   : > { %v903_v32 = vstv %s1596_s9  ;;  %v1096_v37 = vstv %s1613_s10  ;;  %s1624_s9 = sld [smem:[#allocation3 + $0x5e]]  ;;  %s1541_s10 = sld [smem:[#allocation3 + $0xb]] }
  0x7f   : > { %v1136_v41 = vstv %s1617_s27  ;;  %s1546_s27 = sld [smem:[#allocation3 + $0x10]] }
  0x80   : > { %v2128_v43 = vld [vmem:[#allocation2 + $0x4] sm:$0xf]  ;;  %v2132_v44 = vld [vmem:[#allocation2] sm:$0xf]  ;;  %v1156_v42 = vstv %s1619_s21  ;;  %s1898_s21 = smov 82  }
  0x81   : > { %1004 = vrot.lane.b32.xlu1 %v2128_v43, %s2862_s25  ;;  %525 = vrot.lane.b32.xlu0 %v2132_v44, %s2862_s25  ;;  %v2136_v46 = vld [vmem:[#allocation2] sm:$0x7]  ;;  %v495_v5 = vrot.slane %v2132_v44, 1  ;;  %v2167_v9 = vld [vmem:[#allocation2 + $0x4] sm:$0x7]  ;;  %v976_v25 = vrot.slane %v2128_v43, 1 }
  0x82   : > { %v351_v47 = vmul.f32 %v350_v45, %v2136_v46  ;;  %v442_v50 = vmul.f32 %v441_v48, %v2136_v46  ;;  %v371_v51 = vmul.f32 %v370_v49, %v2136_v46  ;;  %v422_v54 = vmul.f32 %v421_v52, %v2136_v46  ;;  %v2150_v58 = vld [vmem:[#allocation2 + $0x1] sm:$0x7]  ;;  %v2190_v33 = vld [vmem:[#allocation2 + $0x5] sm:$0x7]  ;;  %s2235_s25 = sld [smem:[#allocation3 + $0x9]] }
  0x83   : > { %v381_v55 = vmul.f32 %v380_v53, %v2136_v46  ;;  %v593_v59 = vmul.f32 %v592_v56, %v2150_v58  ;;  %v452_v60 = vmul.f32 %v451_v57, %v2136_v46  ;;  %v684_v63 = vmul.f32 %v683_v61, %v2150_v58  ;;  %v1723_v48 = vld [vmem:[#allocation7 + $0x4] ss:$8 sps:$4 sm:$0x77]  }
  0x84   : > { %v613_v0 = vmul.f32 %v612_v62, %v2150_v58  ;;  %v694_v3 = vmul.f32 %v693_v1, %v2150_v58  ;;  %v623_v4 = vmul.f32 %v622_v2, %v2150_v58  ;;  %v735_v8 = vmul.f32 %v734_v6, %v2150_v58 }
  0x85   : > { %1020 = vrot.lane.b32.xlu1 %v2128_v43, %s1890_s30  ;;  %543 = vrot.lane.b32.xlu0 %v2132_v44, %s1890_s30  ;;  %s1568_s30 = sld [smem:[#allocation3 + $0x26]]  ;;  %v497_v10 = vmul.f32 %v495_v5, %v493_v7  ;;  %v854_v13 = vmul.f32 %v853_v11, %v2167_v9  ;;  %v864_v17 = vmul.f32 %v863_v15, %v2167_v9  ;;  %v1226_v49 = vstv %s1626_s29  ;;  %s1605_s29 = sld [smem:[#allocation3 + $0x4b]] }
  0x86   : > { %v755_v18 = vmul.f32 %v754_v16, %v2150_v58  ;;  %v765_v20 = vmul.f32 %v764_v19, %v2150_v58  ;;  %v934_v24 = vmul.f32 %v933_v21, %v2167_v9  ;;  %v834_v26 = vmul.f32 %v833_v22, %v2167_v9 }
  0x87   : > { %v978_v29 = vmul.f32 %v976_v25, %v974_v27  ;;  %v1087_v34 = vmul.f32 %v1086_v31, %v2190_v33  ;;  %v904_v36 = vmul.f32 %v903_v32, %v2167_v9  ;;  %v1097_v39 = vmul.f32 %v1096_v37, %v2190_v33 }
  0x88   : > { %v1067_v40 = vmul.f32 %v1066_v38, %v2190_v33  ;;  %v1137_v45 = vmul.f32 %v1136_v41, %v2190_v33  ;;  %v1299_v53 = vrot.slane %v1723_v48, %v2122_v35  ;;  %v330_v61 = vstv %s1538_s20  ;;  %s2227_s20 = sld [smem:[#allocation3 + $0x16]] }
  0x89   : > { %353 = vrot.lane.b32.xlu1 %v351_v47, %s1891_s6  ;;  %507 = vrot.lane.b32.xlu0 %v2132_v44, %s1892_s23  ;;  %v1157_v47 = vmul.f32 %v1156_v42, %v2190_v33  ;;  %v331_v62 = vmul.f32 %v330_v61, %v2136_v46  ;;  %v411_v1 = vstv %s1546_s27  ;;  %s2232_s27 = sld [smem:[#allocation3 + $0x1e]] }
  0x8a   : > { %v412_v2 = vmul.f32 %v411_v1, %v2136_v46 }
  0x8b   : > { %v663_v12 = vstv %s1568_s30  ;;  %s1598_s30 = sld [smem:[#allocation3 + $0x44]]  ;;  %v1003_v7 = vstv %s1605_s29  ;;  %s2240_s29 = sld [smem:[#allocation3 + $0x6]] }
  0x8c   : > { %v664_v14 = vmul.f32 %v663_v12, %v2150_v58 }
  0x8d   : > { %444 = vrot.lane.b32.xlu1 %v442_v50, %s1893_s11  ;;  %373 = vrot.lane.b32.xlu0 %v371_v51, %s1891_s6  ;;  %v1227_v51 = vmul.f32 %v1226_v49, %v2190_v33 }
  0x8e   : > { %v473_v27 = vstv %s2227_s20  ;;  %s2265_s20 = sld [smem:[#allocation3 + $0x12]] }
  0x8f   : > { %v582_v38 = vstv %s2232_s27  ;;  %s2290_s27 = sld [smem:[#allocation3 + $0x39]] }
  0x90   : > { %v583_v49 = vmul.f32 %v582_v38, %v2150_v58 }
  0x91   : > { %424 = vrot.lane.b32.xlu1 %v422_v54, %s1893_s11  ;;  %383 = vrot.lane.b32.xlu0 %v381_v55, %s1891_s6  ;;  %v923_v28 = vstv %s1598_s30  ;;  %s1620_s30 = sld [smem:[#allocation3 + $0x5a]]  ;;  %v1236_v54 = vstv %s1627_s5  ;;  %s2223_s5 = sld [smem:[#allocation3 + $0x4c]] }
  0x92   : > { %v924_v30 = vmul.f32 %v923_v28, %v2167_v9  ;;  %v1206_v55 = vstv %s1624_s9  ;;  %v1237_v56 = vmul.f32 %v1236_v54, %v2190_v33  ;;  %s2225_s9 = sld [smem:[#allocation3 + $0x1b]]  ;;  %v316_v48 = vstv %s2240_s29  ;;  %s2296_s29 = sld [smem:[#allocation3 + $0x1d]] }
  0x93   : > { %v1207_v57 = vmul.f32 %v1206_v55, %v2190_v33 }
  0x95   : > { %595 = vrot.lane.b32.xlu1 %v593_v59, %s1894_s28  ;;  %454 = vrot.lane.b32.xlu0 %v452_v60, %s1893_s11  ;;  %v1313_v59 = vcombine.high %v1299_v53, %v1299_v53 }
  0x97   : > { %v1166_v50 = vstv %s1620_s30  ;;  %v1320_v60 = vrot.slane %v1313_v59, %v2122_v35  ;;  %s1556_s30 = sld [smem:[#allocation3 + $0x1a]]  ;;  %v317_v59 = vmul.f32 %v316_v48, %v2136_v46 }
  0x98   : > { %v1167_v52 = vmul.f32 %v1166_v50, %v2190_v33 }
  0x99   : > { %686 = vrot.lane.b32.xlu1 %v684_v63, %s1895_s4  ;;  %615 = vrot.lane.b32.xlu0 %v613_v0, %s1894_s28  ;;  %v360_v63 = vstv %s1541_s10  ;;  %s2229_s10 = sld [smem:[#allocation3 + $0x5]] }
  0x9a   : > { %v361_v0 = vmul.f32 %v360_v63, %v2136_v46 }
  0x9d   : > { %696 = vrot.lane.b32.xlu1 %v694_v3, %s1895_s4  ;;  %625 = vrot.lane.b32.xlu0 %v623_v4, %s1894_s28  ;;  %v524_v11 = vstv %s1556_s30  ;;  %s2248_s30 = sld [smem:[#allocation3 + $0x24]] }
  0xa1   : > { %737 = vrot.lane.b32.xlu1 %v735_v8, %s1896_s22  ;;  %499 = vrot.lane.b32.xlu0 %v497_v10, %s1897_s18 }
  0xa5   : > { %856 = vrot.lane.b32.xlu1 %v854_v13, %s1891_s6  ;;  %666 = vrot.lane.b32.xlu0 %v664_v14, %s1895_s4 }
  0xa9   : > { %866 = vrot.lane.b32.xlu1 %v864_v17, %s1891_s6  ;;  %757 = vrot.lane.b32.xlu0 %v755_v18, %s1896_s22 }
  0xad   : > { %988 = vrot.lane.b32.xlu1 %v2128_v43, %s1892_s23  ;;  %767 = vrot.lane.b32.xlu0 %v765_v20, %s1896_s22  ;;  %v1019_v20 = vstv %s2223_s5  ;;  %s2253_s5 = sld [smem:[#allocation3 + $0xf]] }
  0xb1   : > { %936 = vrot.lane.b32.xlu1 %v934_v24, %s1893_s11  ;;  %836 = vrot.lane.b32.xlu0 %v834_v26, %s1891_s6  ;;  %v542_v24 = vstv %s2225_s9  ;;  %v2245_v26 = vrot.slane %v1299_v53, %v2122_v35  ;;  %s2262_s9 = sld [smem:[#allocation3 + $0x27]] }
  0xb3   : > { %v1327_v37 = vcombine.high %v2245_v26, %v2245_v26  ;;  %v401_v54 = vstv %s2253_s5  ;;  %s1562_s5 = sld [smem:[#allocation3 + $0x20]] }
  0xb4   : > { %v402_v63 = vmul.f32 %v401_v54, %v2136_v46 }
  0xb5   : > { %980 = vrot.lane.b32.xlu1 %v978_v29, %s1897_s18  ;;  %926 = vrot.lane.b32.xlu0 %v924_v30, %s1893_s11 }
  0xb9   : > { %1089 = vrot.lane.b32.xlu1 %v1087_v34, %s1894_s28  ;;  %906 = vrot.lane.b32.xlu0 %v904_v36, %s1893_s11  ;;  %v313_v34 = vstv %s2229_s10  ;;  %v474_v36 = vmul.f32 %v473_v27, %v2132_v44  ;;  %s2280_s10 = sld [smem:[#allocation3 + $0x17]] }
  0xba   : > { %v314_v42 = vmul.f32 %v313_v34, %v2136_v46 }
  0xbd   : > { %1099 = vrot.lane.b32.xlu1 %v1097_v39, %s1894_s28  ;;  %1069 = vrot.lane.b32.xlu0 %v1067_v40, %s1894_s28  ;;  %v340_v39 = vstv %s2235_s25  ;;  %s2273_s25 = sld [smem:[#allocation3 + $0x2c]] }
  0xbe   : > { %v341_v50 = vmul.f32 %v340_v39, %v2136_v46 }
  0xc1   : > { %1139 = vrot.lane.b32.xlu1 %v1137_v45, %s1895_s4  ;;  %1159 = vrot.lane.b32.xlu0 %v1157_v47, %s1895_s4 }
  0xc5   : > { %1229 = vrot.lane.b32.xlu1 %v1227_v51, %s1896_s22  ;;  %1169 = vrot.lane.b32.xlu0 %v1167_v52, %s1895_s4  ;;  %v643_v51 = vstv %s2248_s30  ;;  %s1590_s30 = sld [smem:[#allocation3 + $0x3c]] }
  0xc6   : > { %v644_v61 = vmul.f32 %v643_v51, %v2150_v58 }
  0xc9   : > { %1239 = vrot.lane.b32.xlu1 %v1237_v56, %s1896_s22  ;;  %1209 = vrot.lane.b32.xlu0 %v1207_v57, %s1896_s22 }
  0xcd   : > { %1321 = vrot.lane.b32.xlu0 %v1320_v60, %s1898_s21 }
  0xd1   : > { %333 = vrot.lane.b32.xlu0 %v331_v62, %s1891_s6 }
  0xd5   : > { %363 = vrot.lane.b32.xlu0 %v361_v0, %s1891_s6  ;;  %v673_v0 = vstv %s2262_s9  ;;  %s1567_s9 = sld [smem:[#allocation3 + $0x25]] }
  0xd9   : > { %414 = vrot.lane.b32.xlu0 %v412_v2, %s1893_s11  ;;  %v431_v2 = vstv %s2265_s20  ;;  %s2321_s20 = sld [smem:[#allocation3 + $0x3]] }
  0xdf   : > { %v307_v39 = vstv %s2321_s20  ;;  %s2381_s20 = sld [smem:[#allocation3 + $0x4a]] }
  0xe0   : > { %v308_v48 = vmul.f32 %v307_v39, %v2136_v46 }
  0xf3   : > { %v1005_v3 = vpop.permute.xlu1 %1004  ;;  %v526_v6 = vpop.permute.xlu0 %525 }
  0xf4   : > { %v1006_v4 = vrot.slane %v1005_v3, 1  ;;  %v1007_v5 = vrot.slane %v1005_v3, 2  ;;  %v527_v8 = vrot.slane %v526_v6, 1  ;;  %v528_v10 = vrot.slane %v526_v6, 2 }
  0xf6   : > { %v1008_v12 = vsel %vm529_vm3, %v1006_v4, %v1007_v5  ;;  %v530_v14 = vsel %vm529_vm3, %v527_v8, %v528_v10  ;;  %v432_v8 = vmul.f32 %v431_v2, %v2136_v46  ;;  %v724_v10 = vstv %s2273_s25  ;;  %s2327_s25 = sld [smem:[#allocation3 + $0x47]] }
  0xf7   : > { %v1021_v13 = vpop.permute.xlu1 %1020  ;;  %v1010_v15 = vmul.f32 %v1008_v12, %v1003_v7  ;;  %v544_v18 = vpop.permute.xlu0 %543  ;;  %v532_v19 = vmul.f32 %v530_v14, %v524_v11  ;;  %v674_v7 = vmul.f32 %v673_v0, %v2150_v58  ;;  %v483_v12 = vstv %s2280_s10  ;;  %s1573_s10 = sld [smem:[#allocation3 + $0x2b]] }
  0xf8   : > { %v1022_v16 = vrot.slane %v1021_v13, 1  ;;  %v1023_v17 = vrot.slane %v1021_v13, 2  ;;  %v545_v21 = vrot.slane %v544_v18, 1  ;;  %v546_v22 = vrot.slane %v544_v18, 2 }
  0xf9   : > { %1012 = vrot.lane.b32.xlu0 %v1010_v15, %s1898_s21  ;;  %534 = vrot.lane.b32.xlu1 %v532_v19, %s1898_s21  ;;  %s1899_s21 = smov 83   ;;  %v813_v18 = vstv %s2290_s27  ;;  %v572_v19 = vstv %s2296_s29  ;;  %s2335_s27 = sld [smem:[#allocation3 + $0x4f]] }
  0xfa   : > { %v1024_v25 = vsel %vm547_vm4, %v1022_v16, %v1023_v17  ;;  %v548_v28 = vsel %vm547_vm4, %v545_v21, %v546_v22  ;;  %v725_v16 = vmul.f32 %v724_v10, %v2150_v58  ;;  %v484_v17 = vmul.f32 %v483_v12, %v2132_v44  ;;  %s2337_s29 = sld [smem:[#allocation3 + $0x2e]] }
  0xfb   : > { %v1026_v29 = vmul.f32 %v1024_v25, %v1019_v20  ;;  %v2251_v30 = vpop.permute.xlu1 %353  ;;  %v2255_v31 = vpop.permute.xlu0 %507  ;;  %v550_v32 = vmul.f32 %v548_v28, %v542_v24  ;;  %v814_v22 = vmul.f32 %v813_v18, %v2167_v9  ;;  %v573_v24 = vmul.f32 %v572_v19, %v2150_v58 }
  0xfc   : > { %v843_v25 = vstv %s1590_s30  ;;  %v602_v44 = vstv %s1562_s5  ;;  %s2350_s30 = sld [smem:[#allocation3 + $0x55]]  ;;  %s2352_s5 = sld [smem:[#allocation3 + $0x3a]]  ;;  %v509_v2 = vrot.slane %v2255_v31, 1  ;;  %vm1373_vm4 = vcmask 1014784  }
  0xfd   : > { %1028 = vrot.lane.b32.xlu0 %v1026_v29, %s1899_s21  ;;  %552 = vrot.lane.b32.xlu1 %v550_v32, %s1899_s21  ;;  %v844_v29 = vmul.f32 %v843_v25, %v2167_v9  ;;  %v603_v32 = vmul.f32 %v602_v44, %v2150_v58 }
  0xff   : > { %v445_v40 = vpop.permute.xlu1 %444  ;;  %v374_v41 = vpop.permute.xlu0 %373  ;;  %v1056_v46 = vstv %s2335_s27  ;;  %s2399_s27 = sld [smem:[#allocation3 + $0x48]] }
 0x100   : > { %v446_v45 = vrot.slane %v445_v40, 1  ;;  %v375_v47 = vrot.slane %v374_v41, 1 }
 0x101   : > { %476 = vrot.lane.b32.xlu0 %v474_v36, %s1897_s18  ;;  %1328 = vrot.lane.b32.xlu1 %v1327_v37, %s1899_s21  ;;  %s1595_s21 = sld [smem:[#allocation3 + $0x41]]  ;;  %v653_v36 = vstv %s1567_s9 }
 0x102   : > { %v376_v52 = vsel %vm325_vm5, %v374_v41, %v375_v47  ;;  %v447_v53 = vsel %vm396_vm6, %v445_v40, %v446_v45  ;;  %v355_v40 = vrot.slane %v2251_v30, 1  ;;  %v954_v45 = vstv %s2327_s25  ;;  %s2372_s9 = sld [smem:[#allocation3 + $0x19]]  ;;  %s2384_s25 = sld [smem:[#allocation3 + $0x43]] }
 0x103   : > { %v2278_v55 = vpop.permute.xlu1 %424  ;;  %v378_v56 = vadd.f32 %v376_v52, %v314_v42  ;;  %v384_v57 = vpop.permute.xlu0 %383  ;;  %v654_v42 = vmul.f32 %v653_v36, %v2150_v58  ;;  %v714_v47 = vstv %s1573_s10  ;;  %v955_v52 = vmul.f32 %v954_v45, %v2128_v43  ;;  %s2396_s10 = sld [smem:[#allocation3 + $0x58]] }
 0x104   : > { %v385_v60 = vrot.slane %v384_v57, 1  ;;  %v426_v51 = vrot.slane %v2278_v55, 1  ;;  %v1116_v0 = vstv %s2350_s30  ;;  %s2417_s30 = sld [smem:[#allocation3 + $0x5d]] }
 0x105   : > { %585 = vrot.lane.b32.xlu0 %v583_v49, %s1894_s28  ;;  %343 = vrot.lane.b32.xlu1 %v341_v50, %s1891_s6  ;;  %v2286_v62 = vadd.f32 %v447_v53, %v378_v56  ;;  %v356_v50 = vsel %vm325_vm5, %v2251_v30, %v355_v40  ;;  %v715_v53 = vmul.f32 %v714_v47, %v2150_v58  ;;  %v744_v56 = vstv %s2337_s29  ;;  %s2408_s29 = sld [smem:[#allocation3 + $0x34]] }
 0x106   : > { %v386_v1 = vsel %vm325_vm5, %v384_v57, %v385_v60  ;;  %v358_v57 = vadd.f32 %v356_v50, %v308_v48  ;;  %v964_v48 = vstv %s2399_s27  ;;  %s1901_s27 = smov 78  }
 0x107   : > { %v2294_v3 = vpop.permute.xlu1 %595  ;;  %v388_v4 = vadd.f32 %v386_v1, %v317_v59  ;;  %v455_v5 = vpop.permute.xlu0 %454  ;;  %v893_v34 = vstv %s1595_s21  ;;  %s2368_s21 = sld [smem:[#allocation3 + $0x40]]  ;;  %v427_v59 = vsel %vm396_vm6, %v2278_v55, %v426_v51  ;;  %v823_v1 = vstv %s2352_s5  ;;  %s2420_s5 = sld [smem:[#allocation3 + $0x4e]] }
 0x108   : > { %v456_v6 = vrot.slane %v455_v5, 1  ;;  %v894_v41 = vmul.f32 %v893_v34, %v2167_v9  ;;  %v510_v55 = vrot.slane %v2255_v31, 2  ;;  %v824_v31 = vmul.f32 %v823_v1, %v2167_v9 }
 0x109   : > { %646 = vrot.lane.b32.xlu0 %v644_v61, %s1895_s4  ;;  %404 = vrot.lane.b32.xlu1 %v402_v63, %s1893_s11  ;;  %v1057_v61 = vmul.f32 %v1056_v46, %v2190_v33  ;;  %v745_v63 = vmul.f32 %v744_v56, %v2150_v58  ;;  %v506_v18 = vstv %s2372_s9  ;;  %v1146_v47 = vstv %s2396_s10  ;;  %s2430_s9 = sld [smem:[#allocation3 + $0x51]]  ;;  %s1625_s10 = sld [smem:[#allocation3 + $0x5f]] }
 0x10a   : > { %v457_v11 = vsel %vm396_vm6, %v455_v5, %v456_v6  ;;  %v512_v19 = vsel %vm511_vm8, %v509_v2, %v510_v55  ;;  %v965_v56 = vmul.f32 %v964_v48, %v2128_v43 }
 0x10b   : > { %v2305_v13 = vpop.permute.xlu1 %686  ;;  %v2307_v14 = vadd.f32 %v457_v11, %v388_v4  ;;  %v2309_v15 = vpop.permute.xlu0 %615  ;;  %v429_v4 = vadd.f32 %v427_v59, %v358_v57  ;;  %v1196_v57 = vstv %s2417_s30  ;;  %s1584_s30 = sld [smem:[#allocation3 + $0x36]] }
 0x10d   : > { %676 = vrot.lane.b32.xlu0 %v674_v7, %s1895_s4  ;;  %434 = vrot.lane.b32.xlu1 %v432_v8, %s1893_s11  ;;  %v597_v7 = vrot.slane %v2294_v3, 7  ;;  %v1117_v8 = vmul.f32 %v1116_v0, %v2190_v33  ;;  %v883_v12 = vstv %s2368_s21  ;;  %s1900_s21 = smov 81   ;;  %v1046_v59 = vstv %s2420_s5  ;;  %s2498_s5 = sld [smem:[#allocation3 + $0x37]] }
 0x10e   : > { %v884_v44 = vmul.f32 %v883_v12, %v2167_v9  ;;  %v1197_v0 = vmul.f32 %v1196_v57, %v2190_v33  ;;  %v1047_v43 = vmul.f32 %v1046_v59, %v2190_v33 }
 0x10f   : > { %v2317_v20 = vpop.permute.xlu1 %696  ;;  %v2319_v21 = vpop.permute.xlu0 %625  ;;  %v1076_v55 = vstv %s2430_s9  ;;  %s2557_s9 = sld [smem:[#allocation3 + $0x7]] }
 0x111   : > { %727 = vrot.lane.b32.xlu0 %v725_v16, %s1896_s22  ;;  %486 = vrot.lane.b32.xlu1 %v484_v17, %s1897_s18 }
 0x113   : > { %v2329_v27 = vpop.permute.xlu1 %737  ;;  %v500_v28 = vpop.permute.xlu0 %499 }
 0x114   : > { %v501_v60 = vrot.slane %v500_v28, 7  ;;  %v739_v39 = vrot.slane %v2329_v27, 7 }
 0x115   : > { %816 = vrot.lane.b32.xlu0 %v814_v22, %s1891_s6  ;;  %575 = vrot.lane.b32.xlu1 %v573_v24, %s1894_s28  ;;  %v598_v22 = vsel %vm567_vm9, %v597_v7, %v2294_v3  ;;  %v514_v3 = vmul.f32 %v512_v19, %v506_v18 }
 0x116   : > { %v502_v58 = vsel %vm468_vm7, %v501_v60, %v500_v28  ;;  %v987_v28 = vstv %s2381_s20  ;;  %v740_v51 = vsel %vm709_vm11, %v739_v39, %v2329_v27  ;;  %s2442_s20 = sld [smem:[#allocation3 + $0x56]] }
 0x117   : > { %v2339_v37 = vpop.permute.xlu0 %666  ;;  %v2341_v38 = vpop.permute.xlu1 %856  ;;  %v504_v16 = vadd.f32 %v502_v58, %v429_v4 }
 0x118   : > { %v668_v24 = vrot.slane %v2339_v37, 7 }
 0x119   : > { %846 = vrot.lane.b32.xlu0 %v844_v29, %s1891_s6  ;;  %605 = vrot.lane.b32.xlu1 %v603_v32, %s1894_s28  ;;  %v913_v32 = vstv %s2384_s25  ;;  %v600_v34 = vadd.f32 %v598_v22, %v504_v16  ;;  %s1622_s25 = sld [smem:[#allocation3 + $0x5c]] }
 0x11a   : > { %v669_v36 = vsel %vm638_vm10, %v668_v24, %v2339_v37  ;;  %v914_v45 = vmul.f32 %v913_v32, %v2167_v9  ;;  %v1216_v32 = vstv %s1625_s10  ;;  %s2600_s10 = sld [smem:[#allocation3 + $0x1c]] }
 0x11b   : > { %v2355_v49 = vpop.permute.xlu0 %757  ;;  %v2364_v54 = vpop.permute.xlu1 %866  ;;  %v671_v37 = vadd.f32 %v669_v36, %v600_v34 }
 0x11d   : > { %896 = vrot.lane.b32.xlu0 %v894_v41, %s1893_s11  ;;  %656 = vrot.lane.b32.xlu1 %v654_v42, %s1895_s4  ;;  %v1725_v41 = vld [vmem:[#allocation7] ss:$8 sps:$4 sm:$0xff]   ;;  %v742_v60 = vadd.f32 %v740_v51, %v671_v37 }
 0x11e   : > { %v1254_v46 = vrot.slane %v1725_v41, %v2122_v35  ;;  %v1217_v41 = vmul.f32 %v1216_v32, %v2190_v33 }
 0x11f   : > { %v2370_v30 = vpop.permute.xlu0 %767  ;;  %v989_v6 = vpop.permute.xlu1 %988  ;;  %v1186_v19 = vstv %s1622_s25  ;;  %s2580_s25 = sld [smem:[#allocation3 + $0x15]] }
 0x120   : > { %v990_v10 = vrot.slane %v989_v6, 1  ;;  %v991_v11 = vrot.slane %v989_v6, 2  ;;  %v1269_v1 = vcombine.high %v1254_v46, %v1254_v46 }
 0x121   : > { %957 = vrot.lane.b32.xlu0 %v955_v52, %s1897_s18  ;;  %717 = vrot.lane.b32.xlu1 %v715_v53, %s1896_s22  ;;  %v787_v52 = vstv %s2408_s29  ;;  %v1147_v53 = vmul.f32 %v1146_v47, %v2190_v33  ;;  %s1902_s29 = smov 79  }
 0x122   : > { %v992_v29 = vsel %vm511_vm8, %v990_v10, %v991_v11  ;;  %v1276_v58 = vrot.slane %v1269_v1, %v2122_v35  ;;  %v1077_v10 = vmul.f32 %v1076_v55, %v2190_v33  ;;  %v1126_v11 = vstv %s2442_s20  ;;  %s2574_s20 = sld [smem:[#allocation3 + $0xe]] }
 0x123   : > { %v2388_v5 = vpop.permute.xlu0 %836  ;;  %v2412_v25 = vpop.permute.xlu1 %936  ;;  %v994_v40 = vmul.f32 %v992_v29, %v987_v28 }
 0x125   : > { %1059 = vrot.lane.b32.xlu0 %v1057_v61, %s1894_s28  ;;  %747 = vrot.lane.b32.xlu1 %v745_v63, %s1896_s22  ;;  %v788_v61 = vmul.f32 %v787_v52, %v2167_v9  ;;  %v838_v63 = vrot.slane %v2388_v5, 1 }
 0x127   : > { %v2401_v17 = vpop.permute.xlu0 %926  ;;  %v981_v50 = vpop.permute.xlu1 %980  ;;  %v789_v4 = vadd.f32 %v788_v61, %v742_v60  ;;  %v839_v6 = vsel %vm325_vm5, %v2388_v5, %v838_v63  ;;  %v1127_v5 = vmul.f32 %v1126_v11, %v2190_v33  ;;  %v617_v60 = vrot.slane %v2309_v15, 7 }
 0x128   : > { %v982_v18 = vrot.slane %v981_v50, 7 }
 0x129   : > { %1119 = vrot.lane.b32.xlu0 %v1117_v8, %s1895_s4  ;;  %826 = vrot.lane.b32.xlu1 %v824_v31, %s1891_s6  ;;  %v841_v31 = vadd.f32 %v839_v6, %v789_v4  ;;  %v618_v4 = vsel %vm567_vm9, %v617_v60, %v2309_v15  ;;  %v627_v6 = vrot.slane %v2319_v21, 7 }
 0x12b   : > { %v907_v42 = vpop.permute.xlu0 %906  ;;  %v2448_v2 = vpop.permute.xlu1 %1089 }
 0x12c   : > { %v908_v7 = vrot.slane %v907_v42, 1 }
 0x12d   : > { %516 = vrot.lane.b32.xlu0 %v514_v3, %s1900_s21  ;;  %886 = vrot.lane.b32.xlu1 %v884_v44, %s1893_s11  ;;  %v983_v44 = vsel %vm468_vm7, %v982_v18, %v981_v50  ;;  %v1187_v3 = vmul.f32 %v1186_v19, %v2190_v33  ;;  %v799_v19 = vstv %s2498_s5  ;;  %s2620_s5 = sld [smem:[#allocation3 + $0x38]] }
 0x12e   : > { %v909_v16 = vsel %vm396_vm6, %v907_v42, %v908_v7  ;;  %v2478_v42 = vrot.slane %v1254_v46, %v2122_v35  ;;  %v759_v7 = vrot.slane %v2355_v49, 7 }
 0x12f   : > { %v1070_v27 = vpop.permute.xlu0 %1069  ;;  %v2462_v12 = vpop.permute.xlu1 %1099  ;;  %v911_v22 = vadd.f32 %v909_v16, %v841_v31  ;;  %v698_v31 = vrot.slane %v2317_v20, 7 }
 0x130   : > { %v1071_v28 = vrot.slane %v1070_v27, 7  ;;  %v1284_v48 = vcombine.high %v2478_v42, %v2478_v42 }
 0x131   : > { %996 = vrot.lane.b32.xlu0 %v994_v40, %s1900_s21  ;;  %916 = vrot.lane.b32.xlu1 %v914_v45, %s1893_s11  ;;  %v985_v34 = vadd.f32 %v983_v44, %v911_v22  ;;  %v628_v44 = vsel %vm567_vm9, %v627_v6, %v2319_v21  ;;  %v800_v21 = vmul.f32 %v799_v19, %v2167_v9 }
 0x132   : > { %v1072_v36 = vsel %vm567_vm9, %v1071_v28, %v1070_v27  ;;  %v688_v27 = vrot.slane %v2305_v13, 7  ;;  %v858_v28 = vrot.slane %v2341_v38, 1 }
 0x133   : > { %v2457_v8 = vpop.permute.xlu0 %1159  ;;  %v1140_v29 = vpop.permute.xlu1 %1139  ;;  %v1074_v45 = vadd.f32 %v1072_v36, %v985_v34  ;;  %v699_v34 = vsel %vm638_vm10, %v698_v31, %v2317_v20 }
 0x134   : > { %v1141_v39 = vrot.slane %v1140_v29, 7  ;;  %v689_v11 = vsel %vm638_vm10, %v688_v27, %v2305_v13  ;;  %v760_v13 = vsel %vm709_vm11, %v759_v7, %v2355_v49  ;;  %v859_v49 = vsel %vm325_vm5, %v2341_v38, %v858_v28 }
 0x135   : > { %1149 = vrot.lane.b32.xlu0 %v1147_v53, %s1895_s4  ;;  %967 = vrot.lane.b32.xlu1 %v965_v56, %s1897_s18  ;;  %v1161_v38 = vrot.slane %v2457_v8, 7 }
 0x137   : > { %v2467_v24 = vpop.permute.xlu0 %1169  ;;  %v2492_v53 = vpop.permute.xlu1 %1229 }
 0x139   : > { %1199 = vrot.lane.b32.xlu0 %v1197_v0, %s1896_s22  ;;  %1049 = vrot.lane.b32.xlu1 %v1047_v43, %s1894_s28  ;;  %v795_v43 = vstv %s1584_s30  ;;  %s2618_s30 = sld [smem:[#allocation3 + $0x2a]] }
 0x13a   : > { %v796_v15 = vmul.f32 %v795_v43, %v2167_v9  ;;  %v1091_v9 = vrot.slane %v2448_v2, 7 }
 0x13b   : > { %v1210_v40 = vpop.permute.xlu0 %1209  ;;  %v2496_v56 = vpop.permute.xlu1 %1239 }
 0x13c   : > { %v1211_v47 = vrot.slane %v1210_v40, 7 }
 0x13d   : > { %1277 = vrot.lane.b32.xlu0 %v1276_v58, %s1901_s27  ;;  %1079 = vrot.lane.b32.xlu1 %v1077_v10, %s1894_s28  ;;  %s2602_s27 = sld [smem:[#allocation3 + $0x23]] }
 0x13e   : > { %v1212_v50 = vsel %vm709_vm11, %v1211_v47, %v1210_v40  ;;  %v938_v47 = vrot.slane %v2412_v25, 1 }
 0x13f   : > { %v2486_v33 = vpop.permute.xlu0 %1321 }
 0x140   : > { %v939_v43 = vsel %vm396_vm6, %v2412_v25, %v938_v47  ;;  %v1162_v25 = vsel %vm638_vm10, %v1161_v38, %v2457_v8  ;;  %v1731_v38 = vld [vmem:[#allocation2] sm:$0xf] }
 0x141   : > { %1307 = vrot.lane.b32.xlu0 %v2245_v26, %s1900_s21  ;;  %1129 = vrot.lane.b32.xlu1 %v1127_v5, %s1895_s4  ;;  %v1142_v26 = vsel %vm638_vm10, %v1141_v39, %v1140_v29  ;;  %s2513_s21 = sld [smem:[#allocation3 + $0x4]]  ;;  %v769_v29 = vrot.slane %v2370_v30, 7 }
 0x142   : > { %v1144_v37 = vadd.f32 %v1142_v26, %v1074_v45  ;;  %v868_v26 = vrot.slane %v2364_v54, 1 }
 0x143   : > { %v2488_v35 = vpop.permute.xlu0 %333  ;;  %v770_v45 = vsel %vm709_vm11, %v769_v29, %v2370_v30  ;;  %v1241_v29 = vrot.slane %v2496_v56, 7 }
 0x144   : > { %v1214_v51 = vadd.f32 %v1212_v50, %v1144_v37 }
 0x145   : > { %1189 = vrot.lane.b32.xlu1 %v1187_v3, %s1896_s22 }
 0x147   : > { %v2490_v52 = vpop.permute.xlu0 %363 }
 0x149   : > { %1219 = vrot.lane.b32.xlu1 %v1217_v41, %s1896_s22 }
 0x14b   : > { %v2494_v46 = vpop.permute.xlu0 %414 }
 0x14d   : > { %1285 = vrot.lane.b32.xlu1 %v1284_v48, %s1902_s29  ;;  %s2608_s29 = sld [smem:[#allocation3 + $0x1]] }
 0x151   : > { %1342 = vrot.lane.b32.xlu1 %v1214_v51, %s1892_s23  ;;  %v310_v51 = vstv %s2513_s21  ;;  %s2877_s21 = smov 126  }
 0x16b   : > { %v1013_v57 = vpop.permute.xlu0 %1012  ;;  %v535_v59 = vpop.permute.xlu1 %534 }
 0x16c   : > { %v536_v61 = vrot.slane %v535_v59, 7  ;;  %v1014_v20 = vrot.slane %v1013_v57, 7 }
 0x16e   : > { %v538_v63 = vsel %vm537_vm12, %v536_v61, %v535_v59  ;;  %v365_v59 = vrot.slane %v2490_v52, 1 }
 0x16f   : > { %v2503_v0 = vpop.permute.xlu0 %1028  ;;  %v540_v1 = vadd.f32 %v538_v63, %v2286_v62  ;;  %v553_v55 = vpop.permute.xlu1 %552  ;;  %v869_v63 = vsel %vm325_vm5, %v2364_v54, %v868_v26  ;;  %v1101_v54 = vrot.slane %v2462_v12, 7  ;;  %v1242_v26 = vsel %vm709_vm11, %v1241_v29, %v2496_v56 }
 0x170   : > { %v554_v58 = vrot.slane %v553_v55, 7 }
 0x171   : > { %v620_v10 = vadd.f32 %v618_v4, %v540_v1  ;;  %v1015_v1 = vsel %vm537_vm12, %v1014_v20, %v1013_v57  ;;  %v1231_v57 = vrot.slane %v2492_v53, 7  ;;  %v1102_v8 = vsel %vm567_vm9, %v1101_v54, %v2462_v12 }
 0x172   : > { %v556_v62 = vsel %vm555_vm13, %v554_v58, %v553_v55  ;;  %v2561_v55 = vld [vmem:[#allocation2] sm:$0x7]  ;;  %v1092_v58 = vsel %vm567_vm9, %v1091_v9, %v2448_v2  ;;  %v1323_v2 = vrot.slane %v2486_v33, 7  ;;  %v803_v54 = vstv %s2620_s5  ;;  %s1635_s5 = sshll.u32 %s1948_s16, 7  ;;  %s1410_s16 = scalar_lea.sflag [#allocation5], %s2102_s17 }
 0x173   : > { %v2516_v16 = vpop.permute.xlu0 %476  ;;  %v691_v18 = vadd.f32 %v689_v11, %v620_v10  ;;  %v558_v5 = vadd.f32 %v556_v62, %v2307_v14  ;;  %v2521_v22 = vpop.permute.xlu1 %1328  ;;  %v928_v14 = vrot.slane %v2401_v17, 1  ;;  %v311_v4 = vmul.f32 %v2561_v55, %v310_v51 }
 0x174   : > { %v366_v10 = vsel %vm325_vm5, %v2490_v52, %v365_v59  ;;  %v1232_v28 = vsel %vm709_vm11, %v1231_v57, %v2492_v53  ;;  %v1324_v12 = vsel %vm537_vm12, %v1323_v2, %v2486_v33  ;;  %v1330_v53 = vrot.slane %v2521_v22, 7 }
 0x175   : > { %v762_v3 = vadd.f32 %v760_v13, %v691_v18  ;;  %v630_v32 = vadd.f32 %v628_v44, %v558_v5  ;;  %v929_v50 = vsel %vm396_vm6, %v2401_v17, %v928_v14  ;;  %v1030_v17 = vrot.slane %v2503_v0, 7 }
 0x176   : > { %v368_v52 = vadd.f32 %v366_v10, %v311_v4 }
 0x177   : > { %v2532_v36 = vpop.permute.xlu0 %585  ;;  %v797_v39 = vadd.f32 %v796_v15, %v762_v3  ;;  %v701_v40 = vadd.f32 %v699_v34, %v630_v32  ;;  %v2535_v41 = vpop.permute.xlu1 %343  ;;  %v1171_v15 = vrot.slane %v2467_v24, 7  ;;  %v1031_v5 = vsel %vm555_vm13, %v1030_v17, %v2503_v0  ;;  %v1732_v17 = vld [vmem:[#allocation2 + $0x1] sm:$0x7] }
 0x179   : > { %v861_v48 = vadd.f32 %v859_v49, %v797_v39  ;;  %v772_v37 = vadd.f32 %v770_v45, %v701_v40  ;;  %v1172_v40 = vsel %vm638_vm10, %v1171_v15, %v2467_v24 }
 0x17b   : > { %v2548_v60 = vpop.permute.xlu0 %646  ;;  %v931_v30 = vadd.f32 %v929_v50, %v861_v48  ;;  %v801_v61 = vadd.f32 %v800_v21, %v772_v37  ;;  %v2551_v27 = vpop.permute.xlu1 %404  ;;  %v319_v21 = vstv %s2557_s9  ;;  %v1331_v48 = vsel %vm555_vm13, %v1330_v53, %v2521_v22  ;;  %s2631_s9 = sld [smem:[#allocation3 + $0x3f]] }
 0x17c   : > { %v320_v33 = vmul.f32 %v2561_v55, %v319_v21  ;;  %v390_v37 = vstv %s2574_s20  ;;  %v462_v50 = vstv %s2580_s25  ;;  %s2633_s20 = sld [smem:[#allocation3 + $0x46]]  ;;  %s2635_s25 = sld [smem:[#allocation3 + $0x2]]  ;;  %v406_v57 = vrot.slane %v2551_v27, 1 }
 0x17d   : > { %v1017_v6 = vadd.f32 %v1015_v1, %v931_v30  ;;  %v871_v7 = vadd.f32 %v869_v63, %v801_v61  ;;  %v391_v59 = vmul.f32 %v2561_v55, %v390_v37  ;;  %v463_v22 = vmul.f32 %v1731_v38, %v462_v50 }
 0x17e   : > { %v561_v30 = vstv %s2600_s10  ;;  %v632_v61 = vstv %s2602_s27  ;;  %s2647_s10 = sld [smem:[#allocation3 + $0x4d]]  ;;  %s2649_s27 = sld [smem:[#allocation3 + $0x54]] }
 0x17f   : > { %v2570_v11 = vpop.permute.xlu0 %676  ;;  %v1094_v31 = vadd.f32 %v1092_v58, %v1017_v6  ;;  %v941_v62 = vadd.f32 %v939_v43, %v871_v7  ;;  %v435_v18 = vpop.permute.xlu1 %434  ;;  %v562_v43 = vmul.f32 %v1732_v17, %v561_v30  ;;  %v633_v4 = vmul.f32 %v1732_v17, %v632_v61 }
 0x180   : > { %v436_v19 = vrot.slane %v435_v18, 1  ;;  %v301_v6 = vstv %s2608_s29  ;;  %v335_v7 = vrot.slane %v2488_v35, 1  ;;  %v703_v58 = vstv %s2618_s30  ;;  %s2662_s29 = sld [smem:[#allocation3 + $0x5b]]  ;;  %s2673_s30 = sld [smem:[#allocation3 + $0x32]] }
 0x181   : > { %v1164_v44 = vadd.f32 %v1162_v25, %v1094_v31  ;;  %v1033_v13 = vadd.f32 %v1031_v5, %v941_v62  ;;  %v302_v25 = vmul.f32 %v2561_v55, %v301_v6  ;;  %v704_v62 = vmul.f32 %v1732_v17, %v703_v58 }
 0x182   : > { %v437_v3 = vsel %vm396_vm6, %v435_v18, %v436_v19  ;;  %v2659_v18 = vld [vmem:[#allocation2 + $0x4] sm:$0x7]  ;;  %v336_v2 = vsel %vm325_vm5, %v2488_v35, %v335_v7  ;;  %v873_v5 = vstv %s2631_s9  ;;  %v944_v19 = vstv %s2633_s20 }
 0x183   : > { %v2588_v32 = vpop.permute.xlu0 %727  ;;  %v1104_v0 = vadd.f32 %v1102_v8, %v1033_v13  ;;  %v2590_v34 = vadd.f32 %v437_v3, %v368_v52  ;;  %v2592_v14 = vpop.permute.xlu1 %486  ;;  %v1234_v39 = vadd.f32 %v1232_v28, %v1164_v44  ;;  %v804_v15 = vmul.f32 %v2659_v18, %v803_v54 }
 0x184   : > { %v478_v52 = vrot.slane %v2516_v16, 1  ;;  %v304_v44 = vstv %s2635_s25  ;;  %v345_v13 = vrot.slane %v2535_v41, 1  ;;  %v407_v8 = vsel %vm396_vm6, %v2551_v27, %v406_v57 }
 0x185   : > { %v1174_v49 = vadd.f32 %v1172_v40, %v1104_v0  ;;  %v1326_v45 = vmul.f32 %v1324_v12, %v1234_v39  ;;  %v338_v29 = vadd.f32 %v336_v2, %v302_v25  ;;  %v874_v35 = vmul.f32 %v2659_v18, %v873_v5  ;;  %v1734_v0 = vld [vmem:[#allocation2 + $0x4] sm:$0xf] }
 0x186   : > { %v945_v39 = vmul.f32 %v1734_v0, %v944_v19  ;;  %v1036_v12 = vstv %s2647_s10  ;;  %v1106_v27 = vstv %s2649_s27  ;;  %v305_v53 = vmul.f32 %v2561_v55, %v304_v44  ;;  %s2810_s27 = scalar_lea.hbm %s2857_s3, %s1635_s5 }
 0x187   : > { %v2606_v20 = vpop.permute.xlu0 %816  ;;  %v1244_v24 = vadd.f32 %v1242_v26, %v1174_v49  ;;  %v2610_v47 = vpop.permute.xlu1 %575  ;;  %1349 = vrot.lane.b32.xlu0 %v1326_v45, %s1892_s23  ;;  %v409_v21 = vadd.f32 %v407_v8, %v338_v29  ;;  %v479_v49 = vsel %vm468_vm7, %v2516_v16, %v478_v52  ;;  %v346_v45 = vsel %vm325_vm5, %v2535_v41, %v345_v13 }
 0x188   : > { %v577_v40 = vrot.slane %v2610_v47, 7  ;;  %v1176_v50 = vstv %s2662_s29  ;;  %v416_v16 = vrot.slane %v2494_v46, 1  ;;  %v488_v41 = vrot.slane %v2592_v14, 1 }
 0x189   : > { %v1333_v56 = vmul.f32 %v1331_v48, %v1244_v24  ;;  %v348_v38 = vadd.f32 %v346_v45, %v305_v53  ;;  %v779_v61 = vstv %s2673_s30  ;;  %v587_v57 = vrot.slane %v2532_v36, 7  ;;  %s1906_s30 = smov [#allocation10]  }
 0x18a   : > { %v417_v54 = vsel %vm396_vm6, %v2494_v46, %v416_v16 }
 0x18b   : > { %v2622_v9 = vpop.permute.xlu0 %846  ;;  %v2624_v51 = vpop.permute.xlu1 %605  ;;  %1363 = vrot.lane.b32.xlu1 %v1333_v56, %s2877_s21  ;;  %322 = vrot.lane.b32.xlu0 %v320_v33, %s1891_s6  ;;  %v1735_v33 = vld [vmem:[#allocation2 + $0x5] sm:$0x7]  ;;  %v648_v56 = vrot.slane %v2548_v60, 7 }
 0x18c   : > { %v1037_v48 = vmul.f32 %v1735_v33, %v1036_v12  ;;  %v1107_v37 = vmul.f32 %v1735_v33, %v1106_v27  ;;  %v607_v30 = vrot.slane %v2624_v51, 7  ;;  %v729_v12 = vrot.slane %v2588_v32, 7 }
 0x18d   : > { %v649_v25 = vsel %vm638_vm10, %v648_v56, %v2548_v60  ;;  %v818_v27 = vrot.slane %v2606_v20, 1 }
 0x18e   : > { %v608_v2 = vsel %vm567_vm9, %v607_v30, %v2624_v51  ;;  %v730_v56 = vsel %vm709_vm11, %v729_v12, %v2588_v32 }
 0x18f   : > { %v2637_v63 = vpop.permute.xlu0 %896  ;;  %v2639_v1 = vpop.permute.xlu1 %656  ;;  %393 = vrot.lane.b32.xlu1 %v391_v59, %s1893_s11  ;;  %465 = vrot.lane.b32.xlu0 %v463_v22, %s1897_s18  ;;  %v578_v59 = vsel %vm567_vm9, %v577_v40, %v2610_v47  ;;  %v481_v22 = vadd.f32 %v479_v49, %v409_v21  ;;  %v1177_v47 = vmul.f32 %v1735_v33, %v1176_v50 }
 0x190   : > { %v658_v52 = vrot.slane %v2639_v1, 7 }
 0x191   : > { %v580_v6 = vadd.f32 %v578_v59, %v481_v22 }
 0x193   : > { %v2652_v10 = vpop.permute.xlu0 %957  ;;  %v2655_v31 = vpop.permute.xlu1 %717  ;;  %564 = vrot.lane.b32.xlu1 %v562_v43, %s1894_s28  ;;  %635 = vrot.lane.b32.xlu0 %v633_v4, %s1895_s4  ;;  %v678_v4 = vrot.slane %v2570_v11, 7  ;;  %v651_v51 = vadd.f32 %v649_v25, %v580_v6 }
 0x194   : > { %v719_v17 = vrot.slane %v2655_v31, 7  ;;  %v959_v30 = vrot.slane %v2652_v10, 1 }
 0x196   : > { %v720_v46 = vsel %vm709_vm11, %v719_v17, %v2655_v31  ;;  %v588_v31 = vsel %vm567_vm9, %v587_v57, %v2532_v36  ;;  %v898_v57 = vrot.slane %v2637_v63, 1 }
 0x197   : > { %v2675_v28 = vpop.permute.xlu0 %1059  ;;  %v2677_v3 = vpop.permute.xlu1 %747  ;;  %706 = vrot.lane.b32.xlu1 %v704_v62, %s1896_s22  ;;  %806 = vrot.lane.b32.xlu0 %v804_v15, %s1891_s6  ;;  %s2692_s6 = sld [smem:[#allocation3 + $0x35]]  ;;  %v489_v62 = vsel %vm468_vm7, %v2592_v14, %v488_v41  ;;  %v419_v15 = vadd.f32 %v417_v54, %v348_v38  ;;  %v679_v14 = vsel %vm638_vm10, %v678_v4, %v2570_v11 }
 0x198   : > { %v749_v5 = vrot.slane %v2677_v3, 7  ;;  %v819_v41 = vsel %vm325_vm5, %v2606_v20, %v818_v27 }
 0x199   : > { %v491_v8 = vadd.f32 %v489_v62, %v419_v15  ;;  %v960_v15 = vsel %vm468_vm7, %v2652_v10, %v959_v30 }
 0x19a   : > { %v750_v11 = vsel %vm709_vm11, %v749_v5, %v2677_v3 }
 0x19b   : > { %v2690_v26 = vpop.permute.xlu0 %1119  ;;  %v2694_v24 = vpop.permute.xlu1 %826  ;;  %876 = vrot.lane.b32.xlu1 %v874_v35, %s1893_s11  ;;  %947 = vrot.lane.b32.xlu0 %v945_v39, %s1897_s18  ;;  %s2724_s11 = sld [smem:[#allocation3 + $0x33]]  ;;  %v780_v35 = vmul.f32 %v2659_v18, %v779_v61  ;;  %v722_v39 = vadd.f32 %v720_v46, %v651_v51  ;;  %v590_v53 = vadd.f32 %v588_v31, %v491_v8  ;;  %s1905_s18 = smov 51  }
 0x19c   : > { %v828_v61 = vrot.slane %v2694_v24, 1 }
 0x19d   : > { %v791_v44 = vstv %s2692_s6  ;;  %v781_v50 = vadd.f32 %v780_v35, %v722_v39 }
 0x19e   : > { %v792_v40 = vmul.f32 %v2659_v18, %v791_v44 }
 0x19f   : > { %v517_v43 = vpop.permute.xlu0 %516  ;;  %v887_v7 = vpop.permute.xlu1 %886  ;;  %1039 = vrot.lane.b32.xlu1 %v1037_v48, %s1894_s28  ;;  %1109 = vrot.lane.b32.xlu0 %v1107_v37, %s1895_s4  ;;  %s1903_s28 = smov 77   ;;  %v821_v6 = vadd.f32 %v819_v41, %v781_v50  ;;  %s297_s4 = sld [smem:[#allocation3]] }
 0x1a0   : > { %v518_v58 = vrot.slane %v517_v43, 7  ;;  %v888_v33 = vrot.slane %v887_v7, 1 }
 0x1a2   : > { %v520_v19 = vsel %vm519_vm14, %v518_v58, %v517_v43 }
 0x1a3   : > { %v522_v60 = vadd.f32 %v520_v19, %v2590_v34  ;;  %v997_v13 = vpop.permute.xlu0 %996  ;;  %v917_v29 = vpop.permute.xlu1 %916  ;;  %1179 = vrot.lane.b32.xlu1 %v1177_v47, %s1896_s22  ;;  %1262 = vrot.lane.b32.xlu0 %v2478_v42, %s1903_s28  ;;  %v848_v34 = vrot.slane %v2622_v9, 1  ;;  %v659_v42 = vsel %vm638_vm10, %v658_v52, %v2639_v1  ;;  %v783_v1 = vstv %s2724_s11  ;;  %s1579_s22 = sld [smem:[#allocation3 + $0x31]] }
 0x1a4   : > { %v918_v21 = vrot.slane %v917_v29, 1  ;;  %v661_v37 = vadd.f32 %v659_v42, %v590_v53  ;;  %v998_v16 = vrot.slane %v997_v13, 7  ;;  %v784_v4 = vmul.f32 %v2659_v18, %v783_v1 }
 0x1a5   : > { %v610_v0 = vadd.f32 %v608_v2, %v522_v60  ;;  %v849_v3 = vsel %vm325_vm5, %v2622_v9, %v848_v34  ;;  %v889_v9 = vsel %vm396_vm6, %v887_v7, %v888_v33  ;;  %v829_v7 = vsel %vm325_vm5, %v2694_v24, %v828_v61 }
 0x1a6   : > { %v919_v38 = vsel %vm396_vm6, %v917_v29, %v918_v21  ;;  %v732_v43 = vadd.f32 %v730_v56, %v661_v37  ;;  %v999_v32 = vsel %vm519_vm14, %v998_v16, %v997_v13  ;;  %v891_v25 = vadd.f32 %v889_v9, %v821_v6 }
 0x1a7   : > { %v681_v36 = vadd.f32 %v679_v14, %v610_v0  ;;  %v968_v49 = vpop.permute.xlu1 %967  ;;  %v1150_v45 = vpop.permute.xlu0 %1149  ;;  %v1121_v52 = vrot.slane %v2690_v26, 7  ;;  %v899_v24 = vsel %vm396_vm6, %v2637_v63, %v898_v57  ;;  %v1061_v0 = vrot.slane %v2675_v28, 7 }
 0x1a8   : > { %v1151_v54 = vrot.slane %v1150_v45, 7  ;;  %v785_v19 = vadd.f32 %v784_v4, %v732_v43  ;;  %v969_v46 = vrot.slane %v968_v49, 1  ;;  %v962_v8 = vadd.f32 %v960_v15, %v891_v25 }
 0x1a9   : > { %v752_v48 = vadd.f32 %v750_v11, %v681_v36  ;;  %v1122_v34 = vsel %vm638_vm10, %v1121_v52, %v2690_v26  ;;  %v1062_v63 = vsel %vm567_vm9, %v1061_v0, %v2675_v28 }
 0x1aa   : > { %v1152_v13 = vsel %vm638_vm10, %v1151_v54, %v1150_v45  ;;  %v831_v14 = vadd.f32 %v829_v7, %v785_v19  ;;  %v970_v39 = vsel %vm468_vm7, %v968_v49, %v969_v46 }
 0x1ab   : > { %v793_v59 = vadd.f32 %v792_v40, %v752_v48  ;;  %v1050_v22 = vpop.permute.xlu1 %1049  ;;  %v1200_v58 = vpop.permute.xlu0 %1199 }
 0x1ac   : > { %v1051_v47 = vrot.slane %v1050_v22, 7  ;;  %v901_v40 = vadd.f32 %v899_v24, %v831_v14 }
 0x1ad   : > { %v851_v17 = vadd.f32 %v849_v3, %v793_v59  ;;  %v1201_v3 = vrot.slane %v1200_v58, 7 }
 0x1ae   : > { %v1052_v60 = vsel %vm567_vm9, %v1051_v47, %v1050_v22  ;;  %v972_v36 = vadd.f32 %v970_v39, %v901_v40 }
 0x1af   : > { %v921_v20 = vadd.f32 %v919_v38, %v851_v17  ;;  %v1080_v62 = vpop.permute.xlu1 %1079  ;;  %v1278_v10 = vpop.permute.xlu0 %1277  ;;  %v1054_v31 = vadd.f32 %v1052_v60, %v962_v8  ;;  %v1202_v56 = vsel %vm709_vm11, %v1201_v3, %v1200_v58 }
 0x1b0   : > { %v1081_v5 = vrot.slane %v1080_v62, 7  ;;  %v1279_v11 = vrot.slane %v1278_v10, 7  ;;  %v1064_v49 = vadd.f32 %v1062_v63, %v972_v36  ;;  %v775_v36 = vstv %s1579_s22 }
 0x1b1   : > { %v1001_v2 = vadd.f32 %v999_v32, %v921_v20  ;;  %v1124_v53 = vadd.f32 %v1122_v34, %v1054_v31 }
 0x1b2   : > { %v1082_v44 = vsel %vm567_vm9, %v1081_v5, %v1080_v62  ;;  %v1281_v45 = vsel %vm1280_vm15, %v1279_v11, %v1278_v10  ;;  %v298_v5 = vstv %s297_s4 }
 0x1b3   : > { %v1084_v51 = vadd.f32 %v1082_v44, %v1001_v2  ;;  %v1130_v29 = vpop.permute.xlu1 %1129  ;;  %v1308_v17 = vpop.permute.xlu0 %1307  ;;  %v299_v46 = vmul.f32 %v2561_v55, %v298_v5 }
 0x1b4   : > { %v1131_v27 = vrot.slane %v1130_v29, 7  ;;  %v1309_v4 = vrot.slane %v1308_v17, 7 }
 0x1b5   : > { %v1154_v35 = vadd.f32 %v1152_v13, %v1084_v51 }
 0x1b6   : > { %v1132_v26 = vsel %vm638_vm10, %v1131_v27, %v1130_v29  ;;  %v1310_v58 = vsel %vm519_vm14, %v1309_v4, %v1308_v17 }
 0x1b7   : > { %v1190_v12 = vpop.permute.xlu1 %1189  ;;  %v1134_v50 = vadd.f32 %v1132_v26, %v1064_v49 }
 0x1b8   : > { %v1191_v42 = vrot.slane %v1190_v12, 7 }
 0x1b9   : > { %v1204_v28 = vadd.f32 %v1202_v56, %v1134_v50 }
 0x1ba   : > { %v1192_v21 = vsel %vm709_vm11, %v1191_v42, %v1190_v12 }
 0x1bb   : > { %v1194_v33 = vadd.f32 %v1192_v21, %v1124_v53  ;;  %v1220_v48 = vpop.permute.xlu1 %1219  ;;  %v776_v21 = vmul.f32 %v2659_v18, %v775_v36 }
 0x1bc   : > { %v1221_v9 = vrot.slane %v1220_v48, 7 }
 0x1bd   : > { %v1283_v37 = vmul.f32 %v1281_v45, %v1194_v33 }
 0x1be   : > { %v1222_v43 = vsel %vm709_vm11, %v1221_v9, %v1220_v48 }
 0x1bf   : > { %v1286_v16 = vpop.permute.xlu1 %1285  ;;  %1335 = vrot.lane.b32.xlu1 %v1283_v37, %s1892_s23  ;;  %v1224_v6 = vadd.f32 %v1222_v43, %v1154_v35  ;;  %s1904_s23 = smov 124  }
 0x1c0   : > { %v1287_v41 = vrot.slane %v1286_v16, 7 }
 0x1c1   : > { %v1312_v54 = vmul.f32 %v1310_v58, %v1224_v6 }
 0x1c2   : > { %v1289_v1 = vsel %vm1288_vm1, %v1287_v41, %v1286_v16 }
 0x1c3   : > { %v1343_v59 = vpop.permute.xlu1 %1342  ;;  %v1291_v22 = vmul.f32 %v1289_v1, %v1204_v28 }
 0x1c4   : > { %v1344_v38 = vrot.slane %v1343_v59, 1 }
 0x1c6   : > { %v1345_v30 = vsel %vm511_vm8, %v1343_v59, %v1344_v38 }
 0x1c7   : > { %v1347_v61 = vadd.f32 %v1345_v30, %v1291_v22 }
 0x1c9   : > { %1356 = vrot.lane.b32.xlu0 %v1347_v61, %s2877_s21  ;;  %s2878_s21 = sshll.u32 %s2102_s17, 3 }
 0x1ca   : > { %s211_s9 = scalar_lea.vmem [#allocation10], %s2878_s21 }
 0x1cb   : > { %s1424_s20 = sshll.u32 %s211_s9, 4  ;;  %s2812_s20 = int_to_ptr.vmem [resolvable:$true] %s1424_s20 }
 0x1cc   : > { %s1808_s29 = scalar_lea.vmem %s2812_s20, 128 }
 0x1cd   : > { %p1809_p11 = scmp.ne.s32.totalorder %s2812_s20, %s1808_s29 }
 0x1cf   : > { %p1810_p6 = pnand %p1809_p11, %p2879_p4 }
 0x1d1   : > { %p1811_p9 = pneg %p1810_p6 }
 0x1f9   : > { %v1350_v32 = vpop.permute.xlu0 %1349 }
 0x1fa   : > { %v1351_v20 = vrot.slane %v1350_v32, 1 }
 0x1fc   : > { %v1352_v47 = vsel %vm511_vm8, %v1350_v32, %v1351_v20 }
 0x1fd   : > { %v1364_v57 = vpop.permute.xlu1 %1363  ;;  %v1354_v62 = vadd.f32 %v1352_v47, %v1312_v54  ;;  %v323_v2 = vpop.permute.xlu0 %322 }
 0x1fe   : > { %v1365_v25 = vrot.slane %v1364_v57, 1  ;;  %v324_v19 = vrot.slane %v323_v2, 1 }
 0x200   : > { %v1366_v15 = vsel %vm529_vm3, %v1364_v57, %v1365_v25  ;;  %v326_v60 = vsel %vm325_vm5, %v323_v2, %v324_v19 }
 0x201   : > { %v1368_v7 = vadd.f32 %v1366_v15, %v1354_v62  ;;  %v394_v52 = vpop.permute.xlu1 %393  ;;  %v466_v13 = vpop.permute.xlu0 %465  ;;  %v328_v14 = vadd.f32 %v326_v60, %v299_v46 }
 0x202   : > { %v395_v44 = vrot.slane %v394_v52, 1  ;;  %v467_v51 = vrot.slane %v466_v13, 1 }
 0x203   : > { %1370 = vrot.lane.b32.xlu1 %v1368_v7, %s1904_s23 }
 0x204   : > { %v397_v8 = vsel %vm396_vm6, %v394_v52, %v395_v44  ;;  %v469_v24 = vsel %vm468_vm7, %v466_v13, %v467_v51  ;;  %v1386_v51 = vsub.s32 0, %v2119_v23 }
 0x205   : > { %v565_v29 = vpop.permute.xlu1 %564  ;;  %v399_v10 = vadd.f32 %v397_v8, %v328_v14  ;;  %v636_v35 = vpop.permute.xlu0 %635  ;;  %v1394_v8 = vsub.s32 2, %v2119_v23 }
 0x206   : > { %v566_v31 = vrot.slane %v565_v29, 7  ;;  %v637_v39 = vrot.slane %v636_v35, 7 }
 0x207   : > { %v471_v0 = vadd.f32 %v469_v24, %v399_v10 }
 0x208   : > { %v568_v34 = vsel %vm567_vm9, %v566_v31, %v565_v29  ;;  %v639_v40 = vsel %vm638_vm10, %v637_v39, %v636_v35  ;;  %v1390_v29 = vsub.s32 1, %v2119_v23 }
 0x209   : > { %v707_v55 = vpop.permute.xlu1 %706  ;;  %v570_v11 = vadd.f32 %v568_v34, %v471_v0  ;;  %v807_v53 = vpop.permute.xlu0 %806 }
 0x20a   : > { %v708_v12 = vrot.slane %v707_v55, 7  ;;  %v808_v45 = vrot.slane %v807_v53, 1 }
 0x20b   : > { %v641_v27 = vadd.f32 %v639_v40, %v570_v11 }
 0x20c   : > { %v710_v42 = vsel %vm709_vm11, %v708_v12, %v707_v55  ;;  %v809_v26 = vsel %vm325_vm5, %v807_v53, %v808_v45  ;;  %v1736_v12 = vld [vmem:[%s2108_s26] sm:$0xff]  ;;  %s1812_s26 = sshll.u32 %s1906_s30, 4  ;;  %s1813_s26 = int_to_ptr.vmem [resolvable:$false] %s1812_s26 }
 0x20d   : > { %v712_v63 = vadd.f32 %v710_v42, %v641_v27  ;;  %v877_v33 = vpop.permute.xlu1 %876  ;;  %v948_v49 = vpop.permute.xlu0 %947  ;;  %s1814_s6 = scalar_lea.vmem %s1813_s26, 256  ;;  %p1815_p12 = scmp.lt.s32.totalorder %s2812_s20, %s1813_s26 }
 0x20e   : > { %v878_v3 = vrot.slane %v877_v33, 1  ;;  %v949_v16 = vrot.slane %v948_v49, 1  ;;  %p1816_p7 = scmp.lt.s32.totalorder %s1814_s6, %s1808_s29 }
 0x20f   : > { %v777_v48 = vadd.f32 %v776_v21, %v712_v63 }
 0x210   : > { %v879_v50 = vsel %vm396_vm6, %v877_v33, %v878_v3  ;;  %v950_v1 = vsel %vm468_vm7, %v948_v49, %v949_v16  ;;  %p1817_p13 = por %p1816_p7, %p1815_p12 }
 0x211   : > { %v811_v37 = vadd.f32 %v809_v26, %v777_v48  ;;  %v1040_v56 = vpop.permute.xlu1 %1039  ;;  %v1110_v59 = vpop.permute.xlu0 %1109 }
 0x212   : > { %v1041_v28 = vrot.slane %v1040_v56, 7  ;;  %v1111_v22 = vrot.slane %v1110_v59, 7  ;;  %p1818_p3 = pnand %p1817_p13, %p1811_p9 }
 0x213   : > { %v881_v41 = vadd.f32 %v879_v50, %v811_v37 }
 0x214   : > { %v1042_v18 = vsel %vm567_vm9, %v1041_v28, %v1040_v56  ;;  %v1112_v9 = vsel %vm638_vm10, %v1111_v22, %v1110_v59 }
 0x215   : > { %v952_v38 = vadd.f32 %v950_v1, %v881_v41  ;;  %v1180_v30 = vpop.permute.xlu1 %1179  ;;  %v1263_v43 = vpop.permute.xlu0 %1262 }
 0x216   : > { %v1181_v17 = vrot.slane %v1180_v30, 7  ;;  %v1264_v32 = vrot.slane %v1263_v43, 7 }
 0x217   : > { %v1044_v61 = vadd.f32 %v1042_v18, %v952_v38 }
 0x218   : > { %v1182_v6 = vsel %vm709_vm11, %v1181_v17, %v1180_v30  ;;  %v1266_v54 = vsel %vm1265_vm2, %v1264_v32, %v1263_v43 }
 0x219   : > { %v1114_v4 = vadd.f32 %v1112_v9, %v1044_v61 }
 0x21b   : > { %v1184_v20 = vadd.f32 %v1182_v6, %v1114_v4 }
 0x21d   : > { %v1268_v62 = vmul.f32 %v1266_v54, %v1184_v20 }
 0x231   : > { %v1336_v58 = vpop.permute.xlu1 %1335 }
 0x232   : > { %v1337_v57 = vrot.slane %v1336_v58, 1 }
 0x234   : > { %v1338_v15 = vsel %vm511_vm8, %v1336_v58, %v1337_v57 }
 0x235   : > { %v1340_v2 = vadd.f32 %v1338_v15, %v1268_v62 }
 0x23b   : > { %v1357_v47 = vpop.permute.xlu0 %1356 }
 0x23c   : > { %v1358_v25 = vrot.slane %v1357_v47, 1 }
 0x23e   : > { %v1359_v7 = vsel %vm529_vm3, %v1357_v47, %v1358_v25  ;;  %vm1404_vm3 = vcmask 416768  }
 0x23f   : > { %v1361_v52 = vadd.f32 %v1359_v7, %v1340_v2 }
 0x275   : > { %v1371_v5 = vpop.permute.xlu1 %1370 }
 0x276   : > { %v1372_v19 = vrot.slane %v1371_v5, 1 }
 0x278   : > { %v1374_v46 = vsel %vm1373_vm4, %v1371_v5, %v1372_v19 }
 0x279   : > { %v1376_v60 = vadd.f32 %v1374_v46, %v1361_v52 }
 0x27b   : > { %v1628_v44 = vmul.f32 -1.442695, %v1376_v60 }
 0x27d   : > { %1726 = vpow2.f32 %v1628_v44 }
 0x287   : > { %v1727_v13 = vpop.eup %1726 }
 0x288   : > { %v1380_v14 = vadd.f32 1.0, %v1727_v13 }
 0x28a   : > { %1728 = vrcp.f32 %v1380_v14 }
 0x294   : > { %v1729_v10 = vpop.eup %1728 }
 0x295   : > { %v1395_v24 = vrot.slane %v1729_v10, %v1394_v8  ;;  %v1387_v31 = vrot.slane %v1729_v10, %v1386_v51  ;;  %v1391_v35 = vrot.slane %v1729_v10, %v1390_v29 }
 0x297   : > { %1399 = vrot.lane.b32.xlu1 %v1395_v24, %s1905_s18  ;;  %v1396_v0 = vcombine.low %v1387_v31, %v1391_v35 }
 0x299   : > { %1397 = vrot.lane.b32.xlu0 %v1396_v0, %s1905_s18 }
 0x309   : > { %v1400_v34 = vpop.permute.xlu1 %1399 }
 0x30a   : > { %v1402_v55 = vrot.slane %v1400_v34, 4 }
 0x30b   : > { %v1398_v39 = vpop.permute.xlu0 %1397 }
 0x30c   : > { %v1401_v11 = vrot.slane %v1398_v39, 4 }
 0x30e   : > { %v1403_v23 = vsel %vm216_vm0, %v1401_v11, %v1402_v55 }
 0x30f   : > { %v1405_v40 = vsel %vm1404_vm3, %v1398_v39, %v1403_v23 }
 0x310   : > { %v1407_v27 = vmul.f32 %v1736_v12, %v1405_v40 }
 0x312   : > { %1408 = vst [vmem:[%s211_s9] sm:$0xff] %v1407_v27 }
 0x313   : > { %1821 = shalt.err (!%p1818_p3)
}
 0x314   : > { %s1822_s17 = scalar_lea.hbm %s2810_s27, 128  ;;  %s1826_s23 = scalar_lea.hbm %s2857_s3, 256 }
 0x315   : > { %p1823_p1 = scmp.ne.s32.totalorder %s2810_s27, %s1822_s17  ;;  %p1827_p2 = scmp.lt.u32.totalorder %s2810_s27, %s2857_s3 }
 0x316   : > { %p1828_p0 = scmp.lt.u32.totalorder %s1826_s23, %s1822_s17  ;;  %p1830_p11 = scmp.lt.u32.totalorder %s1822_s17, %s2810_s27 }
 0x317   : > { %p1824_p5 = pnand %p1823_p1, %p2879_p4 }
 0x318   : > { %p1829_p8 = por %p1828_p0, %p1827_p2 }
 0x319   : > { %p1825_p10 = pneg %p1824_p5 }
 0x31a   : > { %p1831_p6 = por %p1830_p11, %p1829_p8 }
 0x31c   : > { %p1832_p9 = pnand %p1831_p6, %p1825_p10 }
 0x31e   : > { %1835 = shalt.err (!%p1832_p9)
}
 0x31f   : > { %1646 = dma.vmem_to_hbm [thread:$0]  (%p2879_p4), %s2812_s20, 128, %s2810_s27, %s1410_s16  }
 0x320 PF: > { %s1436_s18 = sand.u32 1, %s1870_s12   ;;  %p2880_p12 = scmp.ne.s32.totalorder %s2865_s19, 0 }
 0x321   : > { %p2881_p7 = scmp.ge.s32.totalorder %s1882_s15, 2  ;;  %s1437_s5 = scalar_lea.sflag [#allocation5], %s1436_s18 }
 0x323   : > { %p1660_p13 = pnand %p2881_p7, %p2880_p12 }
 0x325   : > { %1865 = dma.done.wait (!%p1660_p13), %s1437_s5, 128  }
 0x326   : > { %1867 = vsyncadd (!%p1660_p13), %s1437_s5, 4294967168  ;;  %p18_p3 = scmp.ge.s32.totalorder %s1983_s24, 4   ;;  %s2882_s12 = smov %s1874_s13 }
 0x327   : > { %s2883_s13 = smov %s1878_s14  ;;  %s2884_s14 = smov %s2041_s7 }
 0x328   : > { %s2885_s15 = smov %s1983_s24  ;;  %20 = sbr.rel (!%p18_p3) target bundleno = 7 (0x7), region = 88 }
 0x32f   :  { %1442 = vsyncpa [#allocation4], 1 }
 0x330   :  { %1444 = vsyncpa [#allocation4 + $0x1], 1 }
 0x331   :  { %1445 = vsyncpa [#allocation9], 1 }
 0x332   :  { %1447 = vsyncpa [#allocation9 + $0x1], 1 }
 0x333   :  { %1448 = vsyncpa [#allocation5], 1 }
 0x334   :  { %1450 = vsyncpa [#allocation5 + $0x1], 1 }
 0x335   :  { %1451 = vsyncpa [#allocation6], 1 }
 0x336   :  { %1453 = vsyncpa [#allocation6 + $0x1], 1 }

</bundles_post_ra>
